<compile_context>
chip_gen: v7x
topology: tpu7x:2x2x1
jax: 0.10.0
libtpu: 0.0.40
codegen_flags: <defaults>
</compile_context>

<pallas_src>
import functools

import jax
import jax.numpy as jnp
from jax.experimental import pallas as pl
from jax.experimental.pallas import tpu as pltpu


def _round_up(x, m):
    return ((x + m - 1) // m) * m


# ----------------------------------------------------------------------------
# Pallas kernel 1: fused 1x1 conv (bias) + PReLU, natural (N, C, M) layout.
#   x_ref : (Cin,  TM) f32   (cast to bf16 after the VMEM load)
#   w_ref : (Cout, Cin) bf16
#   b_ref : (Cout, 1)  f32     a_ref : (Cout, 1) f32 (per-channel PReLU slope)
#   o_ref : (Cout, TM) bf16  (M is the lane dim -> dense loads and stores)
# ----------------------------------------------------------------------------
def _conv1x1_prelu_kernel(x_ref, w_ref, b_ref, a_ref, o_ref):
    x = x_ref[...].astype(jnp.bfloat16)
    y = jax.lax.dot_general(
        w_ref[...], x, (((1,), (0,)), ((), ())),
        preferred_element_type=jnp.float32)                # (Cout, TM) f32 acc
    y = y + b_ref[...]
    y = jnp.where(y >= 0.0, y, a_ref[...] * y)             # PReLU
    o_ref[...] = y.astype(o_ref.dtype)                     # lane-dense bf16 store


def conv1x1_prelu(x_nchw, weight, bias, alpha, *, tm_default=2048,
                  out_dtype=jnp.bfloat16):
    """BasicBlock(conv 1x1 + PReLU), tiled over (batch, M = H*W).

    x_nchw: (N, Cin, H, W) f32; weight: (Cin, Cout); bias, alpha: (Cout,).
    Returns (N, Cout, H, W) in `out_dtype` (bf16 by default, f32 accumulation).
    """
    n, cin, h, w = x_nchw.shape
    cout = weight.shape[1]
    m = h * w

    m_pad = _round_up(m, 128)
    tm = min(tm_default, m_pad)          # tm_default must be a multiple of 128
    while m_pad % tm:                    # terminates at 128 (m_pad % 128 == 0)
        tm -= 128

    x_flat = x_nchw.reshape(n, cin, m)                      # free reshape
    if m_pad != m:
        x_flat = jnp.pad(x_flat, ((0, 0), (0, 0), (0, m_pad - m)))
    w_oc = jnp.transpose(weight, (1, 0)).astype(jnp.bfloat16)   # (Cout, Cin)
    b2 = bias.reshape(cout, 1).astype(jnp.float32)
    a2 = alpha.reshape(cout, 1).astype(jnp.float32)

    flops = 2 * n * m_pad * cin * cout
    bytes_accessed = (n * cin * m_pad * 4 + w_oc.size * 2
                      + (b2.size + a2.size) * 4 + n * cout * m_pad * 2)

    out = pl.pallas_call(
        _conv1x1_prelu_kernel,
        out_shape=jax.ShapeDtypeStruct((n, cout, m_pad), out_dtype),
        grid=(n, m_pad // tm),
        in_specs=[
            pl.BlockSpec((None, cin, tm), lambda b, i: (b, 0, i)),
            pl.BlockSpec((cout, cin), lambda b, i: (0, 0)),
            pl.BlockSpec((cout, 1), lambda b, i: (0, 0)),
            pl.BlockSpec((cout, 1), lambda b, i: (0, 0)),
        ],
        out_specs=pl.BlockSpec((None, cout, tm), lambda b, i: (b, 0, i)),
        compiler_params=pltpu.CompilerParams(
            dimension_semantics=("parallel", "parallel")),
        cost_estimate=pl.CostEstimate(
            flops=flops, transcendentals=0, bytes_accessed=bytes_accessed),
    )(x_flat, w_oc, b2, a2)

    if m_pad != m:
        out = out[:, :, :m]
    return out.reshape(n, cout, h, w)


# ----------------------------------------------------------------------------
# Pallas kernel 2: per-(batch, query-tile) cross-scale attention core.
#   xq_ref : (TQ,  KQ) bf16  query patches
#   wk_ref : (KQ,  L)  bf16  keys, pre-L2-normalized and pre-scaled (softmax_scale)
#   wv_ref : (KV,  L)  bf16  raw value patches, natural unfold layout
#   o_ref  : (TQ,  KV) f32   softmax(q . k) @ v
# ----------------------------------------------------------------------------
def _cross_scale_attn_kernel(xq_ref, wk_ref, wv_ref, o_ref):
    s = jax.lax.dot_general(
        xq_ref[...], wk_ref[...], (((1,), (0,)), ((), ())),
        preferred_element_type=jnp.float32)                # (TQ, L) f32
    m = jnp.max(s, axis=1, keepdims=True)
    e = jnp.exp(s - m)
    p = e * pl.reciprocal(jnp.sum(e, axis=1, keepdims=True), approx=True)
    o_ref[...] = jax.lax.dot_general(
        p.astype(jnp.bfloat16), wv_ref[...], (((1,), (1,)), ((), ())),
        preferred_element_type=jnp.float32)                # (TQ, KV)


def _kv_block_spec(block_shape, index_map):
    """Key/value blocks only change with the batch grid axis; single-buffer
    them so they do not pay 2x VMEM across query tiles (matters on v7x)."""
    try:
        return pl.BlockSpec(block_shape, index_map, pipeline_mode=pl.Buffered(1))
    except Exception:  # older jax without pipeline_mode / Buffered
        return pl.BlockSpec(block_shape, index_map)


def cross_scale_attention_core(x_q, w_key, w_val, *, tq_default=512):
    """x_q: (N, HW, kq); w_key: (N, kq, L); w_val: (N, kv, L).

    Returns (N, HW, kv) float32.
    """
    n, hw, kq = x_q.shape
    L = w_key.shape[2]
    kv = w_val.shape[1]

    kq_pad = _round_up(kq, 128)            # aligned QK contraction (small tensors)
    tq = min(tq_default, _round_up(hw, 128))   # TQ is a multiple of 128
    hw_pad = _round_up(hw, tq)

    x_q = jnp.pad(x_q.astype(jnp.bfloat16),
                  ((0, 0), (0, hw_pad - hw), (0, kq_pad - kq)))
    w_key = jnp.pad(w_key.astype(jnp.bfloat16),
                    ((0, 0), (0, kq_pad - kq), (0, 0)))
    w_val = w_val.astype(jnp.bfloat16)     # no pad / transpose pass on the big tensor

    flops = 2 * n * hw_pad * L * (kq_pad + kv)
    bytes_accessed = (x_q.size * 2 + w_key.size * 2 + w_val.size * 2
                      + n * hw_pad * kv * 4)

    out = pl.pallas_call(
        _cross_scale_attn_kernel,
        out_shape=jax.ShapeDtypeStruct((n, hw_pad, kv), jnp.float32),
        grid=(n, hw_pad // tq),
        in_specs=[
            pl.BlockSpec((None, tq, kq_pad), lambda b, q: (b, q, 0)),
            _kv_block_spec((None, kq_pad, L), lambda b, q: (b, 0, 0)),
            _kv_block_spec((None, kv, L), lambda b, q: (b, 0, 0)),
        ],
        out_specs=pl.BlockSpec((None, tq, kv), lambda b, q: (b, q, 0)),
        compiler_params=pltpu.CompilerParams(
            # Batch axis "parallel", query axis "arbitrary": the v7x megacore
            # split lands on batch so both cores never DMA the same K/V block.
            dimension_semantics=("parallel", "arbitrary"),
            # 48 MiB: above the 32 MiB default, headroom on v7x's 64 MiB VMEM.
            # TODO(synk): raise to ~96 MiB (and tq_default to 512-1024) on
            #             128 MiB parts; for large L move to an L-tiled
            #             online-softmax variant so VMEM stays bounded.
            vmem_limit_bytes=48 * 1024 * 1024),
        cost_estimate=pl.CostEstimate(
            flops=flops, transcendentals=n * hw_pad * L,
            bytes_accessed=bytes_accessed),
    )(x_q, w_key, w_val)
    return out[:, :hw, :]


# ----------------------------------------------------------------------------
# JAX glue: extract_image_patches ('same' padding, torch.nn.Unfold ordering)
# ----------------------------------------------------------------------------
def extract_patches(x, ksize, stride):
    """x: (N, C, H, W) -> (N, C*ksize*ksize, L) natural unfold layout."""
    n, c, h, w = x.shape
    out_h = -(-h // stride)
    out_w = -(-w // stride)
    pad_h = max(0, (out_h - 1) * stride + ksize - h)
    pad_w = max(0, (out_w - 1) * stride + ksize - w)
    pt, pb = pad_h // 2, pad_h - pad_h // 2
    pleft, pright = pad_w // 2, pad_w - pad_w // 2
    xp = jnp.pad(x, ((0, 0), (0, 0), (pt, pb), (pleft, pright)))
    pieces = []
    for ky in range(ksize):
        for kx in range(ksize):
            pieces.append(xp[:, :, ky:ky + out_h * stride:stride,
                             kx:kx + out_w * stride:stride])
    p = jnp.stack(pieces, axis=2)                 # (N, C, k*k, out_h, out_w)
    return p.reshape(n, c * ksize * ksize, out_h * out_w)


# ----------------------------------------------------------------------------
# JAX glue: col2im fold == F.conv_transpose2d(yi, wi_center, stride=scale,
# padding=scale) -- pure scatter-add of overlapping K x K patches.
# Valid for module stride == 1 (conv_transpose stride == padding == scale).
# ----------------------------------------------------------------------------
def fold_transpose(contrib, n, c, h, w, scale, ksize):
    # contrib: (N, H*W, C*K*K), K = scale*ksize; output (N, C, scale*H, scale*W)
    contrib = contrib.reshape(n, h, w, c, ksize, scale, ksize, scale)
    acc = jnp.zeros((n, c, h + ksize - 1, scale, w + ksize - 1, scale),
                    jnp.float32)
    for ty in range(ksize):
        for tx in range(ksize):
            piece = contrib[:, :, :, :, ty, :, tx, :]          # (n, iy, ix, c, py, px)
            piece = jnp.transpose(piece, (0, 3, 1, 4, 2, 5))   # (n, c, iy, py, ix, px)
            acc = acc.at[:, :, ty:ty + h, :, tx:tx + w, :].add(piece)
    pad_blk = 1  # conv_transpose padding (=scale) expressed in stride(=scale) blocks
    out = acc[:, :, pad_blk:pad_blk + h, :, pad_blk:pad_blk + w, :]
    return out.reshape(n, c, scale * h, scale * w)


# ----------------------------------------------------------------------------
# Full forward
# ----------------------------------------------------------------------------
def cross_scale_attention(params, input_ref, input_lr, *, ksize=3, scale=3,
                          stride=1, softmax_scale=10.0, eps=1e-4, average=True):
    if stride != 1:
        # TODO(synk): fold_transpose only supports conv_transpose stride == padding
        #             (i.e. module stride == 1, the default).
        raise NotImplementedError("stride != 1 not supported")
    if not average:
        # TODO(synk): hard-argmax (average=False) branch not implemented.
        raise NotImplementedError("average=False not supported")

    n, c, h, w = input_ref.shape
    cr = params["match1_w"].shape[1]

    # Fused 1x1 convs on input_ref: conv_assembly (C->C) + conv_match_1 (C->Cr).
    w_fused = jnp.concatenate([params["assembly_w"], params["match1_w"]], axis=1)
    b_fused = jnp.concatenate([params["assembly_b"], params["match1_b"]])
    a_fused = jnp.concatenate([jnp.broadcast_to(params["assembly_a"], (c,)),
                               jnp.broadcast_to(params["match1_a"], (cr,))])
    fused = conv1x1_prelu(input_ref, w_fused, b_fused, a_fused)   # (N, C+Cr, H, W) bf16
    embed_w = fused[:, :c]
    match_input = fused[:, c:]

    # conv_match_2 on input_LR (C -> Cr)
    ref = conv1x1_prelu(input_lr, params["match2_w"], params["match2_b"],
                        jnp.broadcast_to(params["match2_a"], (cr,)))

    kernel = scale * ksize
    # value patches from embed_w, natural unfold layout (N, C*K*K, L): the
    # 81x-duplicated tensor is fed to the kernel with no transpose/pad/cast.
    w_val = extract_patches(embed_w, kernel, stride * scale)
    # key patches from the LR ref, natural layout (N, Cr*k*k, L)
    w_lr = extract_patches(ref, ksize, stride)
    # query patches, (N, HW, Cr*k*k); small tensor, known-good MXU orientation
    x_q = jnp.transpose(extract_patches(match_input, ksize, 1), (0, 2, 1))

    # Per-key-patch L2 norm (escape_NaN clamp) in f32, with softmax_scale
    # folded in so the kernel never re-scales the score matrix.
    w_lr_f32 = w_lr.astype(jnp.float32)
    norm = jnp.sqrt(jnp.sum(w_lr_f32 * w_lr_f32, axis=1, keepdims=True))
    w_key = (w_lr_f32 * (softmax_scale / jnp.maximum(norm, eps))
             ).astype(jnp.bfloat16)

    contrib = cross_scale_attention_core(x_q, w_key, w_val)       # (N, HW, C*K*K) f32

    out = fold_transpose(contrib, n, c, h, w, scale * stride, ksize)
    return out / 6.0


def init_params(key, channel, reduction):
    cr = channel // reduction
    ks = jax.random.split(key, 6)
    f32 = jnp.float32
    return {
        "match1_w": (0.1 * jax.random.normal(ks[0], (channel, cr))).astype(f32),
        "match1_b": (0.01 * jax.random.normal(ks[1], (cr,))).astype(f32),
        "match1_a": jnp.array([0.25], f32),
        "match2_w": (0.1 * jax.random.normal(ks[2], (channel, cr))).astype(f32),
        "match2_b": (0.01 * jax.random.normal(ks[3], (cr,))).astype(f32),
        "match2_a": jnp.array([0.25], f32),
        "assembly_w": (0.1 * jax.random.normal(ks[4], (channel, channel))).astype(f32),
        "assembly_b": (0.01 * jax.random.normal(ks[5], (channel,))).astype(f32),
        "assembly_a": jnp.array([0.25], f32),
    }


if __name__ == "__main__":
    channel, reduction, ksize, scale, stride = 8, 2, 3, 3, 1
    N, H, W = 2, 12, 12

    root = jax.random.PRNGKey(0)
    k_in1, k_in2, k_par = jax.random.split(root, 3)
    input_ref = jax.random.normal(k_in1, (N, channel, H, W), jnp.float32)
    input_lr = jax.random.normal(k_in2, (N, channel, H // scale, W // scale),
                                 jnp.float32)
    params = init_params(k_par, channel, reduction)

    fwd = jax.jit(functools.partial(cross_scale_attention, ksize=ksize,
                                    scale=scale, stride=stride,
                                    softmax_scale=10.0, eps=1e-4))
    out = jax.block_until_ready(fwd(params, input_ref, input_lr))

    assert out.shape == (N, channel, scale * H, scale * W), out.shape
    assert bool(jnp.all(jnp.isfinite(out)))
    print("KERNEL_OK")
</pallas_src>

<mosaic_0001>
module attributes {stable_mosaic.version = 11 : i64} {
  func.func @_conv1x1_prelu_kernel(%arg0: i32, %arg1: i32, %arg2: memref<1x8x256xf32, #tpu.memory_space<vmem>>, %arg3: memref<12x8xbf16, #tpu.memory_space<vmem>>, %arg4: memref<12x1xf32, #tpu.memory_space<vmem>>, %arg5: memref<12x1xf32, #tpu.memory_space<vmem>>, %arg6: memref<1x12x256xbf16, #tpu.memory_space<vmem>>) attributes {dimension_semantics = [#tpu.dimension_semantics<parallel>, #tpu.dimension_semantics<parallel>], iteration_bounds = array<i64: 2, 1>, scalar_prefetch = 0 : i64, scratch_operands = 0 : i64, tpu.core_type = #tpu.core_type<tc>, window_params = [{transform_indices = @transform_0, window_bounds = array<i64: 1, 8, 256>}, {pipeline_mode = #tpu.pipeline_mode<synchronous>, transform_indices = @transform_1, window_bounds = array<i64: 12, 8>}, {pipeline_mode = #tpu.pipeline_mode<synchronous>, transform_indices = @transform_2, window_bounds = array<i64: 12, 1>}, {pipeline_mode = #tpu.pipeline_mode<synchronous>, transform_indices = @transform_3, window_bounds = array<i64: 12, 1>}, {transform_indices = @transform_4, window_bounds = array<i64: 1, 12, 256>}]} {
    %c0 = arith.constant 0 : index
    %c0_0 = arith.constant 0 : index
    %c0_1 = arith.constant 0 : index
    %0 = vector.load %arg2[%c0, %c0_0, %c0_1] : memref<1x8x256xf32, #tpu.memory_space<vmem>>, vector<1x8x256xf32>
    %1 = vector.shape_cast %0 : vector<1x8x256xf32> to vector<8x256xf32>
    %2 = arith.truncf %1 : vector<8x256xf32> to vector<8x256xbf16>
    %c0_2 = arith.constant 0 : index
    %c0_3 = arith.constant 0 : index
    %3 = vector.load %arg3[%c0_2, %c0_3] : memref<12x8xbf16, #tpu.memory_space<vmem>>, vector<12x8xbf16>
    %cst = arith.constant dense<0.000000e+00> : vector<12x256xf32>
    %4 = tpu.matmul %3, %2, %cst {dimension_numbers = #tpu.dot_dimension_numbers<[1], [0], [0], [1], [0, 0, 1, 1], [], []>} : vector<12x8xbf16>, vector<8x256xbf16>, vector<12x256xf32> -> vector<12x256xf32>
    %c0_4 = arith.constant 0 : index
    %c0_5 = arith.constant 0 : index
    %5 = vector.load %arg4[%c0_4, %c0_5] : memref<12x1xf32, #tpu.memory_space<vmem>>, vector<12x1xf32>
    %6 = vector.broadcast %5 : vector<12x1xf32> to vector<12x256xf32>
    %7 = arith.addf %4, %6 : vector<12x256xf32>
    %cst_6 = arith.constant 0.000000e+00 : f32
    %8 = vector.broadcast %cst_6 : f32 to vector<12x256xf32>
    %9 = arith.cmpf oge, %7, %8 : vector<12x256xf32>
    %c0_7 = arith.constant 0 : index
    %c0_8 = arith.constant 0 : index
    %10 = vector.load %arg5[%c0_7, %c0_8] : memref<12x1xf32, #tpu.memory_space<vmem>>, vector<12x1xf32>
    %11 = vector.broadcast %10 : vector<12x1xf32> to vector<12x256xf32>
    %12 = arith.mulf %11, %7 : vector<12x256xf32>
    %13 = arith.select %9, %7, %12 : vector<12x256xi1>, vector<12x256xf32>
    %14 = arith.truncf %13 : vector<12x256xf32> to vector<12x256xbf16>
    %c0_9 = arith.constant 0 : index
    %c0_10 = arith.constant 0 : index
    %c0_11 = arith.constant 0 : index
    %15 = vector.load %arg6[%c0_9, %c0_10, %c0_11] : memref<1x12x256xbf16, #tpu.memory_space<vmem>>, vector<1x12x256xbf16>
    %16 = vector.shape_cast %15 : vector<1x12x256xbf16> to vector<12x256xbf16>
    %17 = vector.shape_cast %14 : vector<12x256xbf16> to vector<1x12x256xbf16>
    tpu.vector_store %arg6[%c0_9, %c0_10, %c0_11], %17 {strides = array<i32>} : memref<1x12x256xbf16, #tpu.memory_space<vmem>>, vector<1x12x256xbf16>,
    return
  }
  func.func @transform_0(%arg0: i32, %arg1: i32) -> (i32, i32, i32) {
    %c0_i32 = arith.constant 0 : i32
    %c0_i32_0 = arith.constant 0 : i32
    return %arg0, %c0_i32, %arg1 : i32, i32, i32
  }
  func.func @transform_1(%arg0: i32, %arg1: i32) -> (i32, i32) {
    %c0_i32 = arith.constant 0 : i32
    %c0_i32_0 = arith.constant 0 : i32
    %c0_i32_1 = arith.constant 0 : i32
    return %c0_i32, %c0_i32_0 : i32, i32
  }
  func.func @transform_2(%arg0: i32, %arg1: i32) -> (i32, i32) {
    %c0_i32 = arith.constant 0 : i32
    %c0_i32_0 = arith.constant 0 : i32
    %c0_i32_1 = arith.constant 0 : i32
    return %c0_i32, %c0_i32_0 : i32, i32
  }
  func.func @transform_3(%arg0: i32, %arg1: i32) -> (i32, i32) {
    %c0_i32 = arith.constant 0 : i32
    %c0_i32_0 = arith.constant 0 : i32
    %c0_i32_1 = arith.constant 0 : i32
    return %c0_i32, %c0_i32_0 : i32, i32
  }
  func.func @transform_4(%arg0: i32, %arg1: i32) -> (i32, i32, i32) {
    %c0_i32 = arith.constant 0 : i32
    %c0_i32_0 = arith.constant 0 : i32
    return %arg0, %c0_i32, %arg1 : i32, i32, i32
  }
}

module attributes {stable_mosaic.version = 11 : i64} {
  func.func @_conv1x1_prelu_kernel(%arg0: i32, %arg1: i32, %arg2: memref<1x8x128xf32, #tpu.memory_space<vmem>>, %arg3: memref<4x8xbf16, #tpu.memory_space<vmem>>, %arg4: memref<4x1xf32, #tpu.memory_space<vmem>>, %arg5: memref<4x1xf32, #tpu.memory_space<vmem>>, %arg6: memref<1x4x128xbf16, #tpu.memory_space<vmem>>) attributes {dimension_semantics = [#tpu.dimension_semantics<parallel>, #tpu.dimension_semantics<parallel>], iteration_bounds = array<i64: 2, 1>, scalar_prefetch = 0 : i64, scratch_operands = 0 : i64, tpu.core_type = #tpu.core_type<tc>, window_params = [{transform_indices = @transform_0, window_bounds = array<i64: 1, 8, 128>}, {pipeline_mode = #tpu.pipeline_mode<synchronous>, transform_indices = @transform_1, window_bounds = array<i64: 4, 8>}, {pipeline_mode = #tpu.pipeline_mode<synchronous>, transform_indices = @transform_2, window_bounds = array<i64: 4, 1>}, {pipeline_mode = #tpu.pipeline_mode<synchronous>, transform_indices = @transform_3, window_bounds = array<i64: 4, 1>}, {transform_indices = @transform_4, window_bounds = array<i64: 1, 4, 128>}]} {
    %c0 = arith.constant 0 : index
    %c0_0 = arith.constant 0 : index
    %c0_1 = arith.constant 0 : index
    %0 = vector.load %arg2[%c0, %c0_0, %c0_1] : memref<1x8x128xf32, #tpu.memory_space<vmem>>, vector<1x8x128xf32>
    %1 = vector.shape_cast %0 : vector<1x8x128xf32> to vector<8x128xf32>
    %2 = arith.truncf %1 : vector<8x128xf32> to vector<8x128xbf16>
    %c0_2 = arith.constant 0 : index
    %c0_3 = arith.constant 0 : index
    %3 = vector.load %arg3[%c0_2, %c0_3] : memref<4x8xbf16, #tpu.memory_space<vmem>>, vector<4x8xbf16>
    %cst = arith.constant dense<0.000000e+00> : vector<4x128xf32>
    %4 = tpu.matmul %3, %2, %cst {dimension_numbers = #tpu.dot_dimension_numbers<[1], [0], [0], [1], [0, 0, 1, 1], [], []>} : vector<4x8xbf16>, vector<8x128xbf16>, vector<4x128xf32> -> vector<4x128xf32>
    %c0_4 = arith.constant 0 : index
    %c0_5 = arith.constant 0 : index
    %5 = vector.load %arg4[%c0_4, %c0_5] : memref<4x1xf32, #tpu.memory_space<vmem>>, vector<4x1xf32>
    %6 = vector.broadcast %5 : vector<4x1xf32> to vector<4x128xf32>
    %7 = arith.addf %4, %6 : vector<4x128xf32>
    %cst_6 = arith.constant 0.000000e+00 : f32
    %8 = vector.broadcast %cst_6 : f32 to vector<4x128xf32>
    %9 = arith.cmpf oge, %7, %8 : vector<4x128xf32>
    %c0_7 = arith.constant 0 : index
    %c0_8 = arith.constant 0 : index
    %10 = vector.load %arg5[%c0_7, %c0_8] : memref<4x1xf32, #tpu.memory_space<vmem>>, vector<4x1xf32>
    %11 = vector.broadcast %10 : vector<4x1xf32> to vector<4x128xf32>
    %12 = arith.mulf %11, %7 : vector<4x128xf32>
    %13 = arith.select %9, %7, %12 : vector<4x128xi1>, vector<4x128xf32>
    %14 = arith.truncf %13 : vector<4x128xf32> to vector<4x128xbf16>
    %c0_9 = arith.constant 0 : index
    %c0_10 = arith.constant 0 : index
    %c0_11 = arith.constant 0 : index
    %15 = vector.load %arg6[%c0_9, %c0_10, %c0_11] : memref<1x4x128xbf16, #tpu.memory_space<vmem>>, vector<1x4x128xbf16>
    %16 = vector.shape_cast %15 : vector<1x4x128xbf16> to vector<4x128xbf16>
    %17 = vector.shape_cast %14 : vector<4x128xbf16> to vector<1x4x128xbf16>
    tpu.vector_store %arg6[%c0_9, %c0_10, %c0_11], %17 {strides = array<i32>} : memref<1x4x128xbf16, #tpu.memory_space<vmem>>, vector<1x4x128xbf16>,
    return
  }
  func.func @transform_0(%arg0: i32, %arg1: i32) -> (i32, i32, i32) {
    %c0_i32 = arith.constant 0 : i32
    %c0_i32_0 = arith.constant 0 : i32
    return %arg0, %c0_i32, %arg1 : i32, i32, i32
  }
  func.func @transform_1(%arg0: i32, %arg1: i32) -> (i32, i32) {
    %c0_i32 = arith.constant 0 : i32
    %c0_i32_0 = arith.constant 0 : i32
    %c0_i32_1 = arith.constant 0 : i32
    return %c0_i32, %c0_i32_0 : i32, i32
  }
  func.func @transform_2(%arg0: i32, %arg1: i32) -> (i32, i32) {
    %c0_i32 = arith.constant 0 : i32
    %c0_i32_0 = arith.constant 0 : i32
    %c0_i32_1 = arith.constant 0 : i32
    return %c0_i32, %c0_i32_0 : i32, i32
  }
  func.func @transform_3(%arg0: i32, %arg1: i32) -> (i32, i32) {
    %c0_i32 = arith.constant 0 : i32
    %c0_i32_0 = arith.constant 0 : i32
    %c0_i32_1 = arith.constant 0 : i32
    return %c0_i32, %c0_i32_0 : i32, i32
  }
  func.func @transform_4(%arg0: i32, %arg1: i32) -> (i32, i32, i32) {
    %c0_i32 = arith.constant 0 : i32
    %c0_i32_0 = arith.constant 0 : i32
    return %arg0, %c0_i32, %arg1 : i32, i32, i32
  }
}

module attributes {stable_mosaic.version = 11 : i64} {
  func.func @_cross_scale_attn_kernel(%arg0: i32, %arg1: i32, %arg2: memref<1x256x128xbf16, #tpu.memory_space<vmem>>, %arg3: memref<1x128x16xbf16, #tpu.memory_space<vmem>>, %arg4: memref<1x648x16xbf16, #tpu.memory_space<vmem>>, %arg5: memref<1x256x648xf32, #tpu.memory_space<vmem>>) attributes {dimension_semantics = [#tpu.dimension_semantics<parallel>, #tpu.dimension_semantics<arbitrary>], iteration_bounds = array<i64: 2, 1>, scalar_prefetch = 0 : i64, scratch_operands = 0 : i64, tpu.core_type = #tpu.core_type<tc>, window_params = [{transform_indices = @transform_0, window_bounds = array<i64: 1, 256, 128>}, {pipeline_mode = #tpu.pipeline_mode<synchronous>, transform_indices = @transform_1, window_bounds = array<i64: 1, 128, 16>}, {pipeline_mode = #tpu.pipeline_mode<synchronous>, transform_indices = @transform_2, window_bounds = array<i64: 1, 648, 16>}, {transform_indices = @transform_3, window_bounds = array<i64: 1, 256, 648>}]} {
    %c0 = arith.constant 0 : index
    %c0_0 = arith.constant 0 : index
    %c0_1 = arith.constant 0 : index
    %0 = vector.load %arg2[%c0, %c0_0, %c0_1] : memref<1x256x128xbf16, #tpu.memory_space<vmem>>, vector<1x256x128xbf16>
    %1 = vector.shape_cast %0 : vector<1x256x128xbf16> to vector<256x128xbf16>
    %c0_2 = arith.constant 0 : index
    %c0_3 = arith.constant 0 : index
    %c0_4 = arith.constant 0 : index
    %2 = vector.load %arg3[%c0_2, %c0_3, %c0_4] : memref<1x128x16xbf16, #tpu.memory_space<vmem>>, vector<1x128x16xbf16>
    %3 = vector.shape_cast %2 : vector<1x128x16xbf16> to vector<128x16xbf16>
    %cst = arith.constant dense<0.000000e+00> : vector<256x16xf32>
    %4 = tpu.matmul %1, %3, %cst {dimension_numbers = #tpu.dot_dimension_numbers<[1], [0], [0], [1], [0, 0, 1, 1], [], []>} : vector<256x128xbf16>, vector<128x16xbf16>, vector<256x16xf32> -> vector<256x16xf32>
    %cst_5 = arith.constant dense<0xFF800000> : vector<256xf32>
    %5 = vector.multi_reduction <maximumf>, %4, %cst_5 [1] : vector<256x16xf32> to vector<256xf32>
    %6 = vector.shape_cast %5 : vector<256xf32> to vector<256x1xf32>
    %7 = vector.broadcast %6 : vector<256x1xf32> to vector<256x16xf32>
    %8 = arith.subf %4, %7 : vector<256x16xf32>
    %9 = math.exp %8 : vector<256x16xf32>
    %cst_6 = arith.constant dense<0.000000e+00> : vector<256xf32>
    %10 = vector.multi_reduction <add>, %9, %cst_6 [1] : vector<256x16xf32> to vector<256xf32>
    %11 = vector.shape_cast %10 : vector<256xf32> to vector<256x1xf32>
    %12 = tpu.reciprocal %11 {approx = true} : vector<256x1xf32> -> vector<256x1xf32>
    %13 = vector.broadcast %12 : vector<256x1xf32> to vector<256x16xf32>
    %14 = arith.mulf %9, %13 : vector<256x16xf32>
    %15 = arith.truncf %14 : vector<256x16xf32> to vector<256x16xbf16>
    %c0_7 = arith.constant 0 : index
    %c0_8 = arith.constant 0 : index
    %c0_9 = arith.constant 0 : index
    %16 = vector.load %arg4[%c0_7, %c0_8, %c0_9] : memref<1x648x16xbf16, #tpu.memory_space<vmem>>, vector<1x648x16xbf16>
    %17 = vector.shape_cast %16 : vector<1x648x16xbf16> to vector<648x16xbf16>
    %cst_10 = arith.constant dense<0.000000e+00> : vector<256x648xf32>
    %18 = tpu.matmul %15, %17, %cst_10 {dimension_numbers = #tpu.dot_dimension_numbers<[1], [1], [0], [0], [0, 0, 1, 0], [], []>} : vector<256x16xbf16>, vector<648x16xbf16>, vector<256x648xf32> -> vector<256x648xf32>
    %c0_11 = arith.constant 0 : index
    %c0_12 = arith.constant 0 : index
    %c0_13 = arith.constant 0 : index
    %19 = vector.load %arg5[%c0_11, %c0_12, %c0_13] : memref<1x256x648xf32, #tpu.memory_space<vmem>>, vector<1x256x648xf32>
    %20 = vector.shape_cast %19 : vector<1x256x648xf32> to vector<256x648xf32>
    %21 = vector.shape_cast %18 : vector<256x648xf32> to vector<1x256x648xf32>
    tpu.vector_store %arg5[%c0_11, %c0_12, %c0_13], %21 {strides = array<i32>} : memref<1x256x648xf32, #tpu.memory_space<vmem>>, vector<1x256x648xf32>,
    return
  }
  func.func @transform_0(%arg0: i32, %arg1: i32) -> (i32, i32, i32) {
    %c0_i32 = arith.constant 0 : i32
    %c0_i32_0 = arith.constant 0 : i32
    return %arg0, %arg1, %c0_i32 : i32, i32, i32
  }
  func.func @transform_1(%arg0: i32, %arg1: i32) -> (i32, i32, i32) {
    %c0_i32 = arith.constant 0 : i32
    %c0_i32_0 = arith.constant 0 : i32
    %c0_i32_1 = arith.constant 0 : i32
    return %arg0, %c0_i32, %c0_i32_0 : i32, i32, i32
  }
  func.func @transform_2(%arg0: i32, %arg1: i32) -> (i32, i32, i32) {
    %c0_i32 = arith.constant 0 : i32
    %c0_i32_0 = arith.constant 0 : i32
    %c0_i32_1 = arith.constant 0 : i32
    return %arg0, %c0_i32, %c0_i32_0 : i32, i32, i32
  }
  func.func @transform_3(%arg0: i32, %arg1: i32) -> (i32, i32, i32) {
    %c0_i32 = arith.constant 0 : i32
    %c0_i32_0 = arith.constant 0 : i32
    return %arg0, %arg1, %c0_i32 : i32, i32, i32
  }
}

</mosaic_0001>

<bundles_post_ra>
// kernel: cross_scale_attention.3
= control target key start
LH: loop header
LB: loop body
LE: loop exit
PB: predicated region body
PF: predicated region fallthrough
CT: control target
= control target key end

     0   :  { %s538_s15 = smov 0   ;;  %s540_s16 = smov 0   ;;  %s593_s0 = inlined_call_operand.vmem [shape: f32[2,8,256], index: 0, kind: input, shape index: {}]   ;;  %s594_s1 = inlined_call_operand.vmem [shape: bf16[12,8], index: 1, kind: input, shape index: {}]   ;;  %s595_s2 = inlined_call_operand.vmem [shape: f32[12,1], index: 2, kind: input, shape index: {}]   ;;  %s596_s3 = inlined_call_operand.vmem [shape: f32[12,1], index: 3, kind: input, shape index: {}]   ;;  %s597_s4 = inlined_call_operand.vmem [shape: bf16[2,12,256], index: 4, kind: output, shape index: {}]  }
   0x1   :  { %s542_s17 = smov 0  }
   0x2 LB: > { %s26_s18 = sadd.s32 1, %s506_s16  ;;  %p444_p0 = scmp.ge.s32.totalorder %s510_s17, 1  ;;  %s510_s17 = sphi %s542_s17, %s14_s17   ;;  %s506_s16 = sphi %s540_s16, %s599_s16   ;;  %s502_s15 = sphi %s538_s15, %s598_s15  }
   0x3   : > { %p28_p1 = scmp.ge.s32.totalorder %s26_s18, 2  ;;  %p183_p2 = scmp.lt.s32.totalorder %s510_s17, 3 }
   0x5   : > { %s601_s18 = smov (%p28_p1, %s26_s18), 0  ;;  %p184_p3 = pnand %p444_p0, %p183_p2 }
   0x6   : > { %p218_p4 = scmp.lt.s32.totalorder (!%p184_p3), %s502_s15, 1  ;;  %v512_v0 = vmov (!%p184_p3), 0   ;;  %v244_v1 = vld [vmem:[%s595_s2] sm:$0xff] (!%p184_p3)  ;;  %v245_v3 = vld [vmem:[%s595_s2 + $0x8] sm:$0xf] (!%p184_p3)  ;;  %vm265_vm0 = vcmask (!%p184_p3), 1043456  }
   0x7   : > { %187 = sbr.rel (%p184_p3) target bundleno = 247 (0xf7), region = 36  ;;  %304 = vmatprep.mubr.bf16.mxu0 (!%p184_p3), %v512_v0  ;;  %485 = vset.pattern.permute.xlu0 (!%p184_p3), %v512_v0  ;;  %v319_v2 = vld [vmem:[%s596_s3] sm:$0xff] (!%p184_p3)  ;;  %v320_v4 = vld [vmem:[%s596_s3 + $0x8] sm:$0xf] (!%p184_p3)  ;;  %vm261_vm1 = vcmask (!%p184_p3), 64512  }
   0x8   : > { %248 = vperm.xlu0 (!%p184_p3), %485, %v244_v1   ;;  %486 = vset.pattern.permute.xlu1 (!%p184_p3), %v512_v0  ;;  %v487_v10 = vld [vmem:[%s594_s1] sm:$0x3f] (!%p184_p3)  }
   0x9   : > { %323 = vperm.xlu1 (!%p184_p3), %486, %v319_v2  }
   0xc   : > { %253 = vperm.xlu0 (!%p184_p3), %485, %v245_v3  }
   0xd   : > { %328 = vperm.xlu1 (!%p184_p3), %486, %v320_v4  }
   0xe   : > { %s603_s15 = smov (!%p218_p4, %s502_s15), 1 }
   0xf   : > { %s456_s25 = sshll.u32 %s603_s15, 4 }
  0x10   : > { %s225_s30 = scalar_lea.vmem %s593_s0, %s456_s25  ;;  %s235_s9 = scalar_lea.vmem %s597_s4, %s456_s25 }
  0x11   : > { %v239_v5 = vld [vmem:[%s225_s30 + $0x8] sm:$0xff]  ;;  %v238_v6 = vld [vmem:[%s225_s30] sm:$0xff] }
  0x12   : > { %v241_v7 = vpack.c.bf16 %v239_v5, %v239_v5  ;;  %v240_v8 = vpack.c.bf16 %v238_v6, %v238_v6 }
  0x14   : > { %450 = vmatprep.subr.msk.bf16.mxu0 %vm265_vm0, %v241_v7  ;;  %v267_v9 = vsel %vm265_vm0, %v240_v8, 0 }
  0x15   : > { %273 = vmatpush1.bf16.msra.mxu0 %v267_v9 }
  0x18   : > { %451 = vmatmul.mubr.msk.bf16.vlgmr.msra.gmra.mrb[0].mxu0 %vm261_vm1, %v487_v10 }
  0x87   : > { %v249_v11 = vpop.permute.xlu0 %248 }
  0x88   : > { %v324_v12 = vpop.permute.xlu1 %323 }
  0x8b   : > { %v254_v16 = vpop.permute.xlu0 %253 }
  0x8c   : > { %v329_v22 = vpop.permute.xlu1 %328 }
  0xeb   : > { %v306_v13 = vpop.f32.mrb[0].mxu0 }
  0xec   : > { %v307_v14 = vadd.f32 %v306_v13, %v249_v11  ;;  %v308_v15 = vpop.f32.mrb[1].mxu0 }
  0xed   : > { %v309_v17 = vadd.f32 %v308_v15, %v249_v11  ;;  %v310_v18 = vpop.f32.mrb[2].mxu0 }
  0xee   : > { %vm315_vm2 = vcmp.ge.f32.partialorder %v307_v14, 0.0  ;;  %v331_v19 = vmul.f32 %v324_v12, %v307_v14  ;;  %v311_v20 = vadd.f32 %v310_v18, %v254_v16  ;;  %v312_v21 = vpop.f32.mrb[3].mxu0 }
  0xef   : > { %vm316_vm3 = vcmp.ge.f32.partialorder %v309_v17, 0.0  ;;  %v332_v23 = vmul.f32 %v324_v12, %v309_v17  ;;  %v313_v24 = vadd.f32 %v312_v21, %v254_v16 }
  0xf0   : > { %v335_v25 = vsel %vm315_vm2, %v307_v14, %v331_v19  ;;  %vm317_vm4 = vcmp.ge.f32.partialorder %v311_v20, 0.0  ;;  %v333_v26 = vmul.f32 %v329_v22, %v311_v20 }
  0xf1   : > { %v336_v27 = vsel %vm316_vm3, %v309_v17, %v332_v23  ;;  %vm318_vm5 = vcmp.ge.f32.partialorder %v313_v24, 0.0  ;;  %v334_v28 = vmul.f32 %v329_v22, %v313_v24 }
  0xf2   : > { %v458_v29 = vpack.c.bf16 %v336_v27, %v335_v25  ;;  %v337_v30 = vsel %vm317_vm4, %v311_v20, %v333_v26 }
  0xf3   : > { %v338_v31 = vsel %vm318_vm5, %v313_v24, %v334_v28 }
  0xf4   : > { %351 = vst [vmem:[%s235_s9] sm:$0xff] %v458_v29  ;;  %v459_v32 = vpack.c.bf16 %v338_v31, %v337_v30 }
  0xf6   : > { %352 = vst [vmem:[%s235_s9 + $0x8] sm:$0x33] %v459_v32 }
  0xf7 PF: > { %s14_s17 = sadd.s32 1, %s510_s17   ;;  %s598_s15 = smov %s506_s16 }
  0xf8   : > { %p11_p5 = scmp.ge.s32.totalorder %s14_s17, 4   ;;  %s599_s16 = smov %s601_s18 }
  0xfa   :  { %13 = sbr.rel (!%p11_p5) target bundleno = 2 (0x2), region = 66 }

// kernel: cross_scale_attention.4
= control target key start
LH: loop header
LB: loop body
LE: loop exit
PB: predicated region body
PF: predicated region fallthrough
CT: control target
= control target key end

     0   :  { %s465_s15 = smov 0   ;;  %s467_s16 = smov 0   ;;  %s507_s0 = inlined_call_operand.vmem [shape: f32[2,8,128], index: 0, kind: input, shape index: {}]   ;;  %s508_s1 = inlined_call_operand.vmem [shape: bf16[4,8], index: 1, kind: input, shape index: {}]   ;;  %s509_s2 = inlined_call_operand.vmem [shape: f32[4,1], index: 2, kind: input, shape index: {}]   ;;  %s510_s3 = inlined_call_operand.vmem [shape: f32[4,1], index: 3, kind: input, shape index: {}]   ;;  %s511_s4 = inlined_call_operand.vmem [shape: bf16[2,4,128], index: 4, kind: output, shape index: {}]  }
   0x1   :  { %s469_s17 = smov 0  }
   0x2 LB: > { %s26_s18 = sadd.s32 1, %s431_s16  ;;  %p371_p0 = scmp.ge.s32.totalorder %s435_s17, 1  ;;  %s435_s17 = sphi %s469_s17, %s14_s17   ;;  %s431_s16 = sphi %s467_s16, %s513_s16   ;;  %s427_s15 = sphi %s465_s15, %s512_s15  }
   0x3   : > { %p28_p1 = scmp.ge.s32.totalorder %s26_s18, 2  ;;  %p180_p2 = scmp.lt.s32.totalorder %s435_s17, 3 }
   0x5   : > { %s515_s18 = smov (%p28_p1, %s26_s18), 0  ;;  %p181_p3 = pnand %p371_p0, %p180_p2 }
   0x6   : > { %p210_p4 = scmp.lt.s32.totalorder (!%p181_p3), %s427_s15, 1  ;;  %v437_v0 = vmov (!%p181_p3), 0.0   ;;  %vm438_vm0 = vmmov (!%p181_p3), 0   ;;  %v228_v1 = vld [vmem:[%s509_s2] sm:$0xf] (!%p181_p3)  ;;  %v439_v2 = vmov (!%p181_p3), 0  }
   0x7   : > { %184 = sbr.rel (%p181_p3) target bundleno = 244 (0xf4), region = 36  ;;  %379 = vmatprep.subr.bf16.mxu0 (!%p181_p3), %v437_v0  ;;  %381 = vmatprep.mubr.msk.bf16.mxu0 (!%p181_p3), %vm438_vm0, %v437_v0  ;;  %v283_v3 = vld [vmem:[%s510_s3] sm:$0xf] (!%p181_p3)  ;;  %vm238_vm1 = vcmask (!%p181_p3), 1043456   ;;  %vm234_vm2 = vcmask (!%p181_p3), 64512  }
   0x8   : > { %412 = vset.pattern.permute.xlu0 (!%p181_p3), %v439_v2  ;;  %v227_v7 = vld [vmem:[%s508_s1] sm:$0x3] (!%p181_p3) }
   0x9   : > { %231 = vperm.xlu0 (!%p181_p3), %412, %v228_v1  }
   0xd   : > { %286 = vperm.xlu0 (!%p181_p3), %412, %v283_v3  }
   0xe   : > { %s517_s15 = smov (!%p210_p4, %s427_s15), 1 }
   0xf   : > { %s372_s21 = sshll.u32 %s517_s15, 3  ;;  %s373_s29 = sshll.u32 %s517_s15, 1 }
  0x10   : > { %s216_s26 = scalar_lea.vmem %s507_s0, %s372_s21  ;;  %s223_s6 = scalar_lea.vmem %s511_s4, %s373_s29 }
  0x11   : > { %v225_v4 = vld [vmem:[%s216_s26] sm:$0xff] }
  0x12   : > { %v226_v5 = vpack.c.bf16 %v225_v4, %v225_v4 }
  0x14   : > { %v240_v6 = vsel %vm238_vm1, %v226_v5, 0 }
  0x15   : > { %380 = vmatpush3.bf16.msra.mxu0 %v240_v6 }
  0x18   : > { %382 = vmatmul.mubr.msk.bf16.vlgmr.msra.gmra.mrb[0].mxu0 %vm234_vm2, %v227_v7 }
  0x88   : > { %v232_v8 = vpop.permute.xlu0 %231 }
  0x8c   : > { %v287_v12 = vpop.permute.xlu0 %286 }
  0xeb   : > { %v276_v9 = vpop.f32.mrb[0].mxu0 }
  0xec   : > { %v277_v10 = vadd.f32 %v276_v9, %v232_v8  ;;  %v383_v11 = vpop.f32.mrb[1].mxu0 }
  0xed   : > { %v279_v13 = vpop.f32.mrb[2].mxu0 }
  0xee   : > { %vm282_vm3 = vcmp.ge.f32.partialorder %v277_v10, 0.0  ;;  %v289_v14 = vmul.f32 %v287_v12, %v277_v10  ;;  %v384_v15 = vpop.f32.mrb[3].mxu0 }
  0xf0   : > { %v290_v16 = vsel %vm282_vm3, %v277_v10, %v289_v14 }
  0xf1   : > { %v291_v17 = vpack.c.bf16 %v290_v16, %v290_v16 }
  0xf3   : > { %292 = vst [vmem:[%s223_s6] sm:$0x3] %v291_v17 }
  0xf4 PF: > { %s14_s17 = sadd.s32 1, %s435_s17   ;;  %s512_s15 = smov %s431_s16 }
  0xf5   : > { %p11_p5 = scmp.ge.s32.totalorder %s14_s17, 4   ;;  %s513_s16 = smov %s515_s18 }
  0xf7   :  { %13 = sbr.rel (!%p11_p5) target bundleno = 2 (0x2), region = 66 }

// kernel: cross_scale_attention.5
= control target key start
LH: loop header
LB: loop body
LE: loop exit
PB: predicated region body
PF: predicated region fallthrough
CT: control target
= control target key end

     0   :  { %s2920_s12 = smov 0   ;;  %s2922_s13 = smov 0   ;;  %s3839_s0 = inlined_call_operand.vmem [shape: bf16[2,256,128], index: 0, kind: input, shape index: {}]   ;;  %s3840_s1 = inlined_call_operand.vmem [shape: bf16[2,128,16], index: 1, kind: input, shape index: {}]   ;;  %s3841_s2 = inlined_call_operand.vmem [shape: bf16[2,648,16], index: 2, kind: input, shape index: {}]   ;;  %s3842_s3 = inlined_call_operand.vmem [shape: f32[2,256,648], index: 3, kind: output, shape index: {}]  }
   0x1   :  { %s2924_s14 = smov 0  }
   0x2 LB: > { %s25_s15 = sadd.s32 1, %s2893_s13  ;;  %p2329_p0 = scmp.ge.s32.totalorder %s2897_s14, 1  ;;  %s2897_s14 = sphi %s2924_s14, %s13_s14   ;;  %s2893_s13 = sphi %s2922_s13, %s3844_s13   ;;  %s2889_s12 = sphi %s2920_s12, %s3843_s12  }
   0x3   : > { %p27_p1 = scmp.ge.s32.totalorder %s25_s15, 2  ;;  %p178_p2 = scmp.lt.s32.totalorder %s2897_s14, 3 }
   0x5   : > { %s3846_s15 = smov (%p27_p1, %s25_s15), 0  ;;  %p179_p3 = pnand %p2329_p0, %p178_p2 }
   0x6   : > { %p222_p4 = scmp.lt.s32.totalorder (!%p179_p3), %s2889_s12, 1  ;;  %vm606_vm0 = vcmask (!%p179_p3), 130048   ;;  %vm2014_vm1 = vcmask (!%p179_p3), 64512  }
   0x7   : > { %182 = sbr.rel (%p179_p3) target bundleno = 1067 (0x42b), region = 32 }
   0xe   : > { %s3848_s12 = smov (!%p222_p4, %s2889_s12), 1 }
   0xf   : > { %s2452_s16 = sshll.u32 %s3848_s12, 6  ;;  %s2451_s20 = sshll.u32 %s3848_s12, 7 }
  0x10   : > { %s235_s19 = scalar_lea.vmem %s3840_s1, %s2452_s16  ;;  %s2948_s23 = scalar_lea.vmem %s3839_s0, %s2451_s20 }
  0x11   : > { %v2682_v0 = vld [vmem:[%s235_s19] sm:$0xff]   ;;  %v2683_v1 = vld [vmem:[%s235_s19 + $0x8] sm:$0xff]   ;;  %v2684_v2 = vld [vmem:[%s235_s19 + $0x10] sm:$0xff]   ;;  %s2655_s24 = smul.u32 324, %s3848_s12 }
  0x12   : > { %2573 = vmatprep.subr.bf16.mxu0 %v2682_v0  ;;  %v2685_v3 = vld [vmem:[%s235_s19 + $0x18] sm:$0xff]   ;;  %v2690_v4 = vld [vmem:[%s2948_s23] sm:$0xff]   ;;  %v2687_v6 = vld [vmem:[%s235_s19 + $0x28] sm:$0xff]   ;;  %s2656_s28 = smul.u32 1536, %s3848_s12 }
  0x13   : > { %2574 = vmatpush3.bf16.msra.mxu0 %v2682_v0  ;;  %2589 = vmatprep.mubr.bf16.mxu0 %v2690_v4  ;;  %v2686_v5 = vld [vmem:[%s235_s19 + $0x20] sm:$0xff]   ;;  %v2688_v7 = vld [vmem:[%s235_s19 + $0x30] sm:$0xff]   ;;  %s2955_s27 = scalar_lea.vmem %s3841_s2, %s2655_s24  ;;  %v2689_v8 = vld [vmem:[%s235_s19 + $0x38] sm:$0xff]  }
  0x14   : > { %2575 = vmatprep.subr.bf16.mxu0 %v2683_v1  ;;  %v2691_v9 = vld [vmem:[%s2948_s23 + $0x8] sm:$0xff]   ;;  %v2692_v10 = vld [vmem:[%s2948_s23 + $0x10] sm:$0xff]   ;;  %v2693_v11 = vld [vmem:[%s2948_s23 + $0x18] sm:$0xff]   ;;  %s3570_s4 = scalar_lea.vmem %s3842_s3, %s2656_s28 }
  0x15   : > { %v2694_v12 = vld [vmem:[%s2948_s23 + $0x20] sm:$0xff]   ;;  %v2695_v13 = vld [vmem:[%s2948_s23 + $0x28] sm:$0xff]   ;;  %v2696_v14 = vld [vmem:[%s2948_s23 + $0x30] sm:$0xff]  }
  0x16   : > { %v2697_v15 = vld [vmem:[%s2948_s23 + $0x38] sm:$0xff]   ;;  %v2698_v16 = vld [vmem:[%s2948_s23 + $0x40] sm:$0xff]   ;;  %v2699_v17 = vld [vmem:[%s2948_s23 + $0x48] sm:$0xff]  }
  0x17   : > { %2576 = vmatpush3.bf16.msra.mxu0 %v2683_v1  ;;  %v2700_v18 = vld [vmem:[%s2948_s23 + $0x50] sm:$0xff]   ;;  %v2701_v19 = vld [vmem:[%s2948_s23 + $0x58] sm:$0xff]   ;;  %v2702_v20 = vld [vmem:[%s2948_s23 + $0x60] sm:$0xff]  }
  0x18   : > { %2577 = vmatprep.subr.bf16.mxu0 %v2684_v2  ;;  %v2703_v21 = vld [vmem:[%s2948_s23 + $0x68] sm:$0xff]   ;;  %v2704_v22 = vld [vmem:[%s2948_s23 + $0x70] sm:$0xff]   ;;  %v2705_v23 = vld [vmem:[%s2948_s23 + $0x78] sm:$0xff]  }
  0x1b   : > { %2578 = vmatpush3.bf16.msra.mxu0 %v2684_v2 }
  0x1c   : > { %2579 = vmatprep.subr.bf16.mxu0 %v2685_v3 }
  0x1f   : > { %2580 = vmatpush3.bf16.msra.mxu0 %v2685_v3 }
  0x20   : > { %2581 = vmatprep.subr.bf16.mxu0 %v2686_v5 }
  0x23   : > { %2582 = vmatpush3.bf16.msra.mxu0 %v2686_v5 }
  0x24   : > { %2583 = vmatprep.subr.bf16.mxu0 %v2687_v6 }
  0x27   : > { %2584 = vmatpush3.bf16.msra.mxu0 %v2687_v6 }
  0x28   : > { %2585 = vmatprep.subr.bf16.mxu0 %v2688_v7 }
  0x2b   : > { %2586 = vmatpush3.bf16.msra.mxu0 %v2688_v7 }
  0x2c   : > { %2587 = vmatprep.subr.bf16.mxu0 %v2689_v8 }
  0x2f   : > { %2588 = vmatpush3.bf16.msra.mxu0 %v2689_v8 }
  0x32   : > { %2590 = vmatmul.mubr.bf16.vlgmr.msra.gmra.mrb[0].mxu0 %v2691_v9 }
  0x33   : > { %2593 = vmatprep.mubr.bf16.mxu0 %v2692_v10 }
  0x3a   : > { %2594 = vmatmul.mubr.bf16.gmra.mrb[4].mxu0 %v2693_v11 }
  0x3b   : > { %2597 = vmatprep.mubr.bf16.mxu0 %v2694_v12 }
  0x42   : > { %2598 = vmatmul.mubr.bf16.gmra.mrb[8].mxu0 %v2695_v13 }
  0x43   : > { %2601 = vmatprep.mubr.bf16.mxu0 %v2696_v14 }
  0x4a   : > { %2602 = vmatmul.mubr.bf16.gmra.mrb[12].mxu0 %v2697_v15 }
  0x4b   : > { %2605 = vmatprep.mubr.bf16.mxu0 %v2698_v16  ;;  %v2706_v16 = vld [vmem:[%s2955_s27 + $0x40] sm:$0xff]  }
  0x4c   : > { %2639 = vmatprep.subr.msk.bf16.mxu1 %vm606_vm0, %v2706_v16  ;;  %v2728_v16 = vld [vmem:[%s2955_s27 + $0x28] sm:$0xff]  }
  0x52   : > { %2606 = vmatmul.mubr.bf16.gmra.mrb[16].mxu0 %v2699_v17  ;;  %v2707_v17 = vld [vmem:[%s2955_s27 + $0xc0] sm:$0xff]  }
  0x53   : > { %2609 = vmatprep.mubr.bf16.mxu0 %v2700_v18  ;;  %v2708_v18 = vld [vmem:[%s2955_s27] sm:$0xff]   ;;  %2647 = vmatprep.subr.msk.bf16.mxu0 %vm606_vm0, %v2707_v17  ;;  %v2729_v17 = vld [vmem:[%s2955_s27 + $0xa8] sm:$0xff]  }
  0x5a   : > { %2610 = vmatmul.mubr.bf16.gmra.mrb[20].mxu0 %v2701_v19  ;;  %v2709_v19 = vld [vmem:[%s2955_s27 + $0x80] sm:$0xff]  }
  0x5b   : > { %2613 = vmatprep.mubr.bf16.mxu0 %v2702_v20  ;;  %v2710_v20 = vld [vmem:[%s2955_s27 + $0x48] sm:$0xff]  }
  0x62   : > { %2614 = vmatmul.mubr.bf16.gmra.mrb[24].mxu0 %v2703_v21  ;;  %v2711_v21 = vld [vmem:[%s2955_s27 + $0xc8] sm:$0xff]  }
  0x63   : > { %2617 = vmatprep.mubr.bf16.mxu0 %v2704_v22  ;;  %v1308_v22 = vsel %vm606_vm0, %v2708_v18, 0  ;;  %v1323_v18 = vsel %vm606_vm0, %v2728_v16, 0 }
  0x64   : > { %2478 = vmatpush3.bf16.xpose.msra.mxu1 %v1308_v22 }
  0x65   : > { %2640 = vmatprep.subr.msk.bf16.mxu1 %vm606_vm0, %v2710_v20 }
  0x6a   : > { %2618 = vmatmul.mubr.bf16.gmra.mrb[28].mxu0 %v2705_v23  ;;  %v1356_v23 = vsel %vm606_vm0, %v2709_v19, 0  ;;  %v1371_v19 = vsel %vm606_vm0, %v2729_v17, 0 }
  0x6b   : > { %2526 = vmatpush3.bf16.xpose.msra.mxu0 %v1356_v23 }
  0x6c   : > { %2648 = vmatprep.subr.msk.bf16.mxu0 %vm606_vm0, %v2711_v21 }
 0x105   : > { %v2972_v24 = vpop.f32.mrb[0].mxu0 }
 0x106   : > { %v2974_v25 = vpop.f32.mrb[1].mxu0  ;;  %v613_v26 = vsel %vm606_vm0, %v2972_v24, -inf }
 0x107   : > { %614 = vmax.xlane.f32.xlu1 %v613_v26  ;;  %v2978_v27 = vpop.f32.mrb[2].mxu0  ;;  %v607_v28 = vsel %vm606_vm0, %v2974_v25, -inf  ;;  %v2712_v26 = vld [vmem:[%s2955_s27 + $0x8] sm:$0xff]  }
 0x108   : > { %608 = vmax.xlane.f32.xlu0 %v607_v28  ;;  %v2982_v29 = vpop.f32.mrb[3].mxu0  ;;  %v616_v30 = vsel %vm606_vm0, %v2978_v27, -inf  ;;  %v2713_v28 = vld [vmem:[%s2955_s27 + $0x88] sm:$0xff]  }
 0x109   : > { %v610_v31 = vsel %vm606_vm0, %v2982_v29, -inf }
 0x10b   : > { %617 = vmax.xlane.f32.xlu1 %v616_v30  ;;  %v1311_v30 = vsel %vm606_vm0, %v2712_v26, 0 }
 0x10c   : > { %611 = vmax.xlane.f32.xlu0 %v610_v31  ;;  %v2714_v31 = vld [vmem:[%s2955_s27 + $0x50] sm:$0xff]   ;;  %2480 = vmatpush3.bf16.xpose.msra.mxu1 %v1311_v30 }
 0x10d   : > { %v2988_v32 = vpop.f32.mrb[4].mxu0  ;;  %2641 = vmatprep.subr.msk.bf16.mxu1 %vm606_vm0, %v2714_v31 }
 0x10e   : > { %v2990_v33 = vpop.f32.mrb[5].mxu0  ;;  %v625_v38 = vsel %vm606_vm0, %v2988_v32, -inf }
 0x10f   : > { %v2992_v34 = vpop.f32.mrb[6].mxu0  ;;  %v619_v35 = vsel %vm606_vm0, %v2990_v33, -inf }
 0x110   : > { %620 = vmax.xlane.f32.xlu0 %v619_v35  ;;  %v2996_v36 = vpop.f32.mrb[7].mxu0  ;;  %v628_v39 = vsel %vm606_vm0, %v2992_v34, -inf  ;;  %v1359_v35 = vsel %vm606_vm0, %v2713_v28, 0 }
 0x111   : > { %v622_v37 = vsel %vm606_vm0, %v2996_v36, -inf  ;;  %2528 = vmatpush3.bf16.xpose.msra.mxu0 %v1359_v35 }
 0x112   : > { %623 = vmax.xlane.f32.xlu1 %v622_v37  ;;  %v2715_v37 = vld [vmem:[%s2955_s27 + $0xd0] sm:$0xff]  }
 0x113   : > { %2649 = vmatprep.subr.msk.bf16.mxu0 %vm606_vm0, %v2715_v37 }
 0x114   : > { %626 = vmax.xlane.f32.xlu0 %v625_v38  ;;  %v2716_v38 = vld [vmem:[%s2955_s27 + $0x10] sm:$0xff]  }
 0x115   : > { %v3004_v40 = vpop.f32.mrb[8].mxu0 }
 0x116   : > { %629 = vmax.xlane.f32.xlu1 %v628_v39  ;;  %v3006_v41 = vpop.f32.mrb[9].mxu0  ;;  %v637_v46 = vsel %vm606_vm0, %v3004_v40, -inf  ;;  %v2717_v39 = vld [vmem:[%s2955_s27 + $0x90] sm:$0xff]  }
 0x117   : > { %v3008_v42 = vpop.f32.mrb[10].mxu0  ;;  %v631_v43 = vsel %vm606_vm0, %v3006_v41, -inf }
 0x118   : > { %632 = vmax.xlane.f32.xlu0 %v631_v43  ;;  %v3012_v44 = vpop.f32.mrb[11].mxu0  ;;  %v640_v47 = vsel %vm606_vm0, %v3008_v42, -inf  ;;  %v1314_v43 = vsel %vm606_vm0, %v2716_v38, 0 }
 0x119   : > { %v634_v45 = vsel %vm606_vm0, %v3012_v44, -inf  ;;  %2482 = vmatpush3.bf16.xpose.msra.mxu1 %v1314_v43 }
 0x11a   : > { %635 = vmax.xlane.f32.xlu1 %v634_v45  ;;  %v2718_v45 = vld [vmem:[%s2955_s27 + $0x58] sm:$0xff]  }
 0x11b   : > { %2642 = vmatprep.subr.msk.bf16.mxu1 %vm606_vm0, %v2718_v45 }
 0x11c   : > { %638 = vmax.xlane.f32.xlu0 %v637_v46  ;;  %v1362_v46 = vsel %vm606_vm0, %v2717_v39, 0 }
 0x11d   : > { %v3020_v48 = vpop.f32.mrb[12].mxu0  ;;  %2530 = vmatpush3.bf16.xpose.msra.mxu0 %v1362_v46 }
 0x11e   : > { %641 = vmax.xlane.f32.xlu1 %v640_v47  ;;  %v3022_v49 = vpop.f32.mrb[13].mxu0  ;;  %v649_v54 = vsel %vm606_vm0, %v3020_v48, -inf  ;;  %v2719_v47 = vld [vmem:[%s2955_s27 + $0xd8] sm:$0xff]  }
 0x11f   : > { %v3024_v50 = vpop.f32.mrb[14].mxu0  ;;  %v643_v51 = vsel %vm606_vm0, %v3022_v49, -inf  ;;  %2650 = vmatprep.subr.msk.bf16.mxu0 %vm606_vm0, %v2719_v47 }
 0x120   : > { %644 = vmax.xlane.f32.xlu0 %v643_v51  ;;  %v3028_v52 = vpop.f32.mrb[15].mxu0  ;;  %v652_v55 = vsel %vm606_vm0, %v3024_v50, -inf  ;;  %v2720_v51 = vld [vmem:[%s2955_s27 + $0x18] sm:$0xff]  }
 0x121   : > { %v646_v53 = vsel %vm606_vm0, %v3028_v52, -inf }
 0x122   : > { %647 = vmax.xlane.f32.xlu1 %v646_v53  ;;  %v2721_v53 = vld [vmem:[%s2955_s27 + $0x98] sm:$0xff]  }
 0x124   : > { %650 = vmax.xlane.f32.xlu0 %v649_v54  ;;  %v1317_v54 = vsel %vm606_vm0, %v2720_v51, 0 }
 0x125   : > { %v3036_v56 = vpop.f32.mrb[16].mxu0  ;;  %2484 = vmatpush3.bf16.xpose.msra.mxu1 %v1317_v54 }
 0x126   : > { %653 = vmax.xlane.f32.xlu1 %v652_v55  ;;  %v3038_v57 = vpop.f32.mrb[17].mxu0  ;;  %v661_v62 = vsel %vm606_vm0, %v3036_v56, -inf  ;;  %v2722_v55 = vld [vmem:[%s2955_s27 + $0x60] sm:$0xff]  }
 0x127   : > { %v3040_v58 = vpop.f32.mrb[18].mxu0  ;;  %v655_v59 = vsel %vm606_vm0, %v3038_v57, -inf  ;;  %2643 = vmatprep.subr.msk.bf16.mxu1 %vm606_vm0, %v2722_v55 }
 0x128   : > { %656 = vmax.xlane.f32.xlu0 %v655_v59  ;;  %v3044_v60 = vpop.f32.mrb[19].mxu0  ;;  %v664_v63 = vsel %vm606_vm0, %v3040_v58, -inf  ;;  %v1365_v59 = vsel %vm606_vm0, %v2721_v53, 0 }
 0x129   : > { %v658_v61 = vsel %vm606_vm0, %v3044_v60, -inf  ;;  %2532 = vmatpush3.bf16.xpose.msra.mxu0 %v1365_v59 }
 0x12a   : > { %659 = vmax.xlane.f32.xlu1 %v658_v61  ;;  %v2723_v61 = vld [vmem:[%s2955_s27 + $0xe0] sm:$0xff]  }
 0x12b   : > { %2651 = vmatprep.subr.msk.bf16.mxu0 %vm606_vm0, %v2723_v61 }
 0x12c   : > { %662 = vmax.xlane.f32.xlu0 %v661_v62  ;;  %v2724_v62 = vld [vmem:[%s2955_s27 + $0x20] sm:$0xff]  }
 0x12d   : > { %v3052_v0 = vpop.f32.mrb[20].mxu0 }
 0x12e   : > { %665 = vmax.xlane.f32.xlu1 %v664_v63  ;;  %v3054_v1 = vpop.f32.mrb[21].mxu0  ;;  %v673_v6 = vsel %vm606_vm0, %v3052_v0, -inf  ;;  %v2725_v63 = vld [vmem:[%s2955_s27 + $0xa0] sm:$0xff]  }
 0x12f   : > { %v3056_v2 = vpop.f32.mrb[22].mxu0  ;;  %v667_v3 = vsel %vm606_vm0, %v3054_v1, -inf }
 0x130   : > { %668 = vmax.xlane.f32.xlu0 %v667_v3  ;;  %v3060_v4 = vpop.f32.mrb[23].mxu0  ;;  %v676_v7 = vsel %vm606_vm0, %v3056_v2, -inf  ;;  %v1320_v3 = vsel %vm606_vm0, %v2724_v62, 0 }
 0x131   : > { %v670_v5 = vsel %vm606_vm0, %v3060_v4, -inf  ;;  %2486 = vmatpush3.bf16.xpose.msra.mxu1 %v1320_v3 }
 0x132   : > { %671 = vmax.xlane.f32.xlu1 %v670_v5  ;;  %v2726_v5 = vld [vmem:[%s2955_s27 + $0x68] sm:$0xff]  }
 0x133   : > { %2644 = vmatprep.subr.msk.bf16.mxu1 %vm606_vm0, %v2726_v5 }
 0x134   : > { %674 = vmax.xlane.f32.xlu0 %v673_v6  ;;  %v1368_v6 = vsel %vm606_vm0, %v2725_v63, 0 }
 0x135   : > { %v3068_v8 = vpop.f32.mrb[24].mxu0  ;;  %2534 = vmatpush3.bf16.xpose.msra.mxu0 %v1368_v6 }
 0x136   : > { %677 = vmax.xlane.f32.xlu1 %v676_v7  ;;  %v3070_v9 = vpop.f32.mrb[25].mxu0  ;;  %v2727_v7 = vld [vmem:[%s2955_s27 + $0xe8] sm:$0xff]  }
 0x137   : > { %v3072_v10 = vpop.f32.mrb[26].mxu0  ;;  %2652 = vmatprep.subr.msk.bf16.mxu0 %vm606_vm0, %v2727_v7  ;;  %v679_v55 = vsel %vm606_vm0, %v3070_v9, -inf }
 0x138   : > { %v3074_v11 = vpop.f32.mrb[27].mxu0 }
 0x139   : > { %2488 = vmatpush3.bf16.xpose.msra.mxu1 %v1323_v18 }
 0x13d   : > { %v3076_v12 = vpop.f32.mrb[28].mxu0  ;;  %2536 = vmatpush3.bf16.xpose.msra.mxu0 %v1371_v19 }
 0x13e   : > { %v3078_v13 = vpop.f32.mrb[29].mxu0 }
 0x13f   : > { %v3080_v14 = vpop.f32.mrb[30].mxu0 }
 0x140   : > { %v3082_v15 = vpop.f32.mrb[31].mxu0 }
 0x194   : > { %v615_v20 = vpop.xlane.xlu1 %614 }
 0x195   : > { %v609_v21 = vpop.xlane.xlu0 %608  ;;  %v705_v23 = vsub.f32 %v2972_v24, %v615_v20 }
 0x196   : > { %v703_v22 = vsub.f32 %v2974_v25, %v609_v21 }
 0x197   : > { %v739_v35 = vmul.f32 1.442695, %v705_v23 }
 0x198   : > { %v735_v26 = vmul.f32 1.442695, %v703_v22  ;;  %v618_v28 = vpop.xlane.xlu1 %617 }
 0x199   : > { %v612_v30 = vpop.xlane.xlu0 %611  ;;  %v706_v37 = vsub.f32 %v2978_v27, %v618_v28 }
 0x19a   : > { %2747 = vpow2.f32 %v735_v26  ;;  %v704_v31 = vsub.f32 %v2982_v29, %v612_v30 }
 0x19b   : > { %v741_v45 = vmul.f32 1.442695, %v706_v37 }
 0x19c   : > { %v737_v38 = vmul.f32 1.442695, %v704_v31 }
 0x19d   : > { %v621_v39 = vpop.xlane.xlu0 %620 }
 0x19e   : > { %2749 = vpow2.f32 %v737_v38  ;;  %v707_v46 = vsub.f32 %v2990_v33, %v621_v39  ;;  %v2730_v38 = vld [vmem:[%s2955_s27 + $0x70] sm:$0xff]  }
 0x19f   : > { %v624_v43 = vpop.xlane.xlu1 %623  ;;  %2751 = vpow2.f32 %v739_v35  ;;  %v688_v35 = vsel %vm606_vm0, %v3072_v10, -inf  ;;  %v2731_v39 = vld [vmem:[%s2955_s27 + $0xf0] sm:$0xff]   ;;  %2645 = vmatprep.subr.msk.bf16.mxu1 %vm606_vm0, %v2730_v38 }
 0x1a0   : > { %2753 = vpow2.f32 %v741_v45  ;;  %v743_v51 = vmul.f32 1.442695, %v707_v46  ;;  %v708_v53 = vsub.f32 %v2996_v36, %v624_v43  ;;  %v2732_v43 = vld [vmem:[%s2955_s27 + $0x30] sm:$0xff]   ;;  %2653 = vmatprep.subr.msk.bf16.mxu0 %vm606_vm0, %v2731_v39  ;;  %v700_v39 = vsel %vm606_vm0, %v3080_v14, -inf }
 0x1a1   : > { %v627_v25 = vpop.xlane.xlu0 %626 }
 0x1a2   : > { %2755 = vpow2.f32 %v743_v51  ;;  %v745_v33 = vmul.f32 1.442695, %v708_v53  ;;  %v709_v61 = vsub.f32 %v2988_v32, %v627_v25  ;;  %v682_v32 = vsel %vm606_vm0, %v3074_v11, -inf  ;;  %v2733_v25 = vld [vmem:[%s2955_s27 + $0xb0] sm:$0xff]  }
 0x1a3   : > { %v630_v47 = vpop.xlane.xlu1 %629  ;;  %v1326_v53 = vsel %vm606_vm0, %v2732_v43, 0 }
 0x1a4   : > { %v3137_v24 = vpop.eup %2747  ;;  %2757 = vpow2.f32 %v745_v33  ;;  %v747_v5 = vmul.f32 1.442695, %v709_v61  ;;  %v710_v6 = vsub.f32 %v2992_v34, %v630_v47  ;;  %v685_v34 = vsel %vm606_vm0, %v3068_v8, -inf  ;;  %2490 = vmatpush3.bf16.xpose.msra.mxu1 %v1326_v53 }
 0x1a5   : > { %v633_v29 = vpop.xlane.xlu0 %632  ;;  %v799_v27 = vsel %vm606_vm0, %v3137_v24, 0.0 }
 0x1a6   : > { %800 = vadd.xlane.f32.xlu0 %v799_v27  ;;  %2759 = vpow2.f32 %v747_v5  ;;  %v749_v19 = vmul.f32 1.442695, %v710_v6  ;;  %v711_v20 = vsub.f32 %v3006_v41, %v633_v29 }
 0x1a7   : > { %v636_v54 = vpop.xlane.xlu1 %635 }
 0x1a8   : > { %v3144_v59 = vpop.eup %2749  ;;  %v712_v26 = vsub.f32 %v3012_v44, %v636_v54  ;;  %2761 = vpow2.f32 %v749_v19  ;;  %v751_v28 = vmul.f32 1.442695, %v711_v20  ;;  %v2737_v19 = vld [vmem:[%s2955_s27 + $0xb8] sm:$0xff]  }
 0x1a9   : > { %v639_v62 = vpop.xlane.xlu0 %638  ;;  %v802_v63 = vsel %vm606_vm0, %v3144_v59, 0.0  ;;  %v3149_v36 = vpop.eup %2751 }
 0x1aa   : > { %803 = vadd.xlane.f32.xlu1 %v802_v63  ;;  %680 = vmax.xlane.f32.xlu0 %v679_v55  ;;  %v805_v16 = vsel %vm606_vm0, %v3149_v36, 0.0  ;;  %v3156_v17 = vpop.eup %2753  ;;  %v713_v41 = vsub.f32 %v3004_v40, %v639_v62  ;;  %v753_v44 = vmul.f32 1.442695, %v712_v26  ;;  %v691_v40 = vsel %vm606_vm0, %v3078_v13, -inf }
 0x1ab   : > { %v642_v3 = vpop.xlane.xlu1 %641  ;;  %v808_v22 = vsel %vm606_vm0, %v3156_v17, 0.0  ;;  %2763 = vpow2.f32 %v751_v28 }
 0x1ac   : > { %v3163_v23 = vpop.eup %2755  ;;  %v714_v45 = vsub.f32 %v3008_v42, %v642_v3  ;;  %v755_v47 = vmul.f32 1.442695, %v713_v41  ;;  %v1374_v42 = vsel %vm606_vm0, %v2733_v25, 0  ;;  %2765 = vpow2.f32 %v753_v44 }
 0x1ad   : > { %v645_v7 = vpop.xlane.xlu0 %644  ;;  %v811_v31 = vsel %vm606_vm0, %v3163_v23, 0.0  ;;  %2538 = vmatpush3.bf16.xpose.msra.mxu0 %v1374_v42  ;;  %v694_v3 = vsel %vm606_vm0, %v3082_v15, -inf }
 0x1ae   : > { %806 = vadd.xlane.f32.xlu0 %v805_v16  ;;  %683 = vmax.xlane.f32.xlu1 %v682_v32  ;;  %v3171_v37 = vpop.eup %2757  ;;  %v715_v51 = vsub.f32 %v3022_v49, %v645_v7  ;;  %v757_v54 = vmul.f32 1.442695, %v714_v45  ;;  %2767 = vpow2.f32 %v755_v47  ;;  %v2734_v7 = vld [vmem:[%s2955_s27 + $0x78] sm:$0xff]  }
 0x1af   : > { %v648_v18 = vpop.xlane.xlu1 %647  ;;  %v814_v29 = vsel %vm606_vm0, %v3171_v37, 0.0  ;;  %v2735_v16 = vld [vmem:[%s2955_s27 + $0xf8] sm:$0xff]   ;;  %2646 = vmatprep.subr.msk.bf16.mxu1 %vm606_vm0, %v2734_v7 }
 0x1b0   : > { %v3187_v27 = vpop.eup %2759  ;;  %v716_v49 = vsub.f32 %v3028_v52, %v648_v18  ;;  %v759_v33 = vmul.f32 1.442695, %v715_v51  ;;  %2769 = vpow2.f32 %v757_v54  ;;  %v2736_v32 = vld [vmem:[%s2955_s27 + $0x38] sm:$0xff]   ;;  %2654 = vmatprep.subr.msk.bf16.mxu0 %vm606_vm0, %v2735_v16 }
 0x1b1   : > { %v651_v21 = vpop.xlane.xlu0 %650  ;;  %v817_v63 = vsel %vm606_vm0, %v3187_v27, 0.0 }
 0x1b2   : > { %686 = vmax.xlane.f32.xlu0 %v685_v34  ;;  %809 = vadd.xlane.f32.xlu1 %v808_v22  ;;  %v717_v61 = vsub.f32 %v3020_v48, %v651_v21  ;;  %v3195_v5 = vpop.eup %2761  ;;  %v761_v52 = vmul.f32 1.442695, %v716_v49  ;;  %2771 = vpow2.f32 %v759_v33  ;;  %v697_v21 = vsel %vm606_vm0, %v3076_v12, -inf }
 0x1b3   : > { %v654_v30 = vpop.xlane.xlu1 %653  ;;  %v820_v34 = vsel %vm606_vm0, %v3195_v5, 0.0 }
 0x1b4   : > { %v718_v6 = vsub.f32 %v3024_v50, %v654_v30  ;;  %v763_v48 = vmul.f32 1.442695, %v717_v61  ;;  %v1329_v50 = vsel %vm606_vm0, %v2736_v32, 0  ;;  %2773 = vpow2.f32 %v761_v52 }
 0x1b5   : > { %v657_v46 = vpop.xlane.xlu0 %656  ;;  %v3210_v22 = vpop.eup %2763  ;;  %2492 = vmatpush3.bf16.xpose.msra.mxu1 %v1329_v50 }
 0x1b6   : > { %812 = vadd.xlane.f32.xlu0 %v811_v31  ;;  %689 = vmax.xlane.f32.xlu1 %v688_v35  ;;  %v719_v18 = vsub.f32 %v3038_v57, %v657_v46  ;;  %v1377_v57 = vsel %vm606_vm0, %v2737_v19, 0  ;;  %v765_v26 = vmul.f32 1.442695, %v718_v6  ;;  %2775 = vpow2.f32 %v763_v48  ;;  %v3215_v35 = vpop.eup %2765 }
 0x1b7   : > { %v660_v55 = vpop.xlane.xlu1 %659  ;;  %2540 = vmatpush3.bf16.xpose.msra.mxu0 %v1377_v57  ;;  %v823_v38 = vsel %vm606_vm0, %v3210_v22, 0.0  ;;  %v826_v51 = vsel %vm606_vm0, %v3215_v35, 0.0 }
 0x1b8   : > { %v720_v28 = vsub.f32 %v3044_v60, %v660_v55  ;;  %v767_v30 = vmul.f32 1.442695, %v719_v18  ;;  %v3221_v43 = vpop.eup %2767  ;;  %2777 = vpow2.f32 %v765_v26 }
 0x1b9   : > { %v663_v62 = vpop.xlane.xlu0 %662  ;;  %v829_v47 = vsel %vm606_vm0, %v3221_v43, 0.0 }
 0x1ba   : > { %815 = vadd.xlane.f32.xlu1 %v814_v29  ;;  %692 = vmax.xlane.f32.xlu0 %v691_v40  ;;  %v721_v31 = vsub.f32 %v3036_v56, %v663_v62  ;;  %v769_v60 = vmul.f32 1.442695, %v720_v28  ;;  %2779 = vpow2.f32 %v767_v30  ;;  %v3225_v40 = vpop.eup %2769 }
 0x1bb   : > { %v666_v20 = vpop.xlane.xlu1 %665  ;;  %v832_v33 = vsel %vm606_vm0, %v3225_v40, 0.0 }
 0x1bc   : > { %v722_v44 = vsub.f32 %v3040_v58, %v666_v20  ;;  %v771_v46 = vmul.f32 1.442695, %v721_v31  ;;  %v3231_v53 = vpop.eup %2771  ;;  %2781 = vpow2.f32 %v769_v60 }
 0x1bd   : > { %v669_v41 = vpop.xlane.xlu0 %668  ;;  %v835_v55 = vsel %vm606_vm0, %v3231_v53, 0.0 }
 0x1be   : > { %818 = vadd.xlane.f32.xlu0 %v817_v63  ;;  %695 = vmax.xlane.f32.xlu1 %v694_v3  ;;  %v723_v56 = vsub.f32 %v3054_v1, %v669_v41  ;;  %v773_v58 = vmul.f32 1.442695, %v722_v44  ;;  %2783 = vpow2.f32 %v771_v46  ;;  %v3235_v54 = vpop.eup %2773 }
 0x1bf   : > { %v672_v45 = vpop.xlane.xlu1 %671  ;;  %v838_v52 = vsel %vm606_vm0, %v3235_v54, 0.0 }
 0x1c0   : > { %v724_v29 = vsub.f32 %v3060_v4, %v672_v45  ;;  %v775_v42 = vmul.f32 1.442695, %v723_v56  ;;  %v3241_v61 = vpop.eup %2775  ;;  %2785 = vpow2.f32 %v773_v58 }
 0x1c1   : > { %v675_v25 = vpop.xlane.xlu0 %674  ;;  %v841_v3 = vsel %vm606_vm0, %v3241_v61, 0.0 }
 0x1c2   : > { %698 = vmax.xlane.f32.xlu0 %v697_v21  ;;  %821 = vadd.xlane.f32.xlu1 %v820_v34  ;;  %v725_v1 = vsub.f32 %v3052_v0, %v675_v25  ;;  %v777_v62 = vmul.f32 1.442695, %v724_v29  ;;  %2787 = vpow2.f32 %v775_v42  ;;  %v3244_v0 = vpop.eup %2777 }
 0x1c3   : > { %v678_v49 = vpop.xlane.xlu1 %677  ;;  %v844_v32 = vsel %vm606_vm0, %v3244_v0, 0.0 }
 0x1c4   : > { %v779_v4 = vmul.f32 1.442695, %v725_v1  ;;  %v726_v63 = vsub.f32 %v3056_v2, %v678_v49  ;;  %v3250_v6 = vpop.eup %2779  ;;  %2789 = vpow2.f32 %v777_v62 }
 0x1c5   : > { %v847_v2 = vsel %vm606_vm0, %v3250_v6, 0.0 }
 0x1c6   : > { %824 = vadd.xlane.f32.xlu0 %v823_v38  ;;  %701 = vmax.xlane.f32.xlu1 %v700_v39  ;;  %2791 = vpow2.f32 %v779_v4  ;;  %v781_v7 = vmul.f32 1.442695, %v726_v63  ;;  %v3252_v16 = vpop.eup %2781  ;;  %v2899_v38 = vmov 0  }
 0x1c7   : > { %v850_v20 = vsel %vm606_vm0, %v3252_v16, 0.0  ;;  %2621 = vmatprep.subr.bf16.mxu1 %v2899_v38  ;;  %1816 = vmatprep.subr.bf16.mxu0 %v2899_v38 }
 0x1c8   : > { %v3258_v48 = vpop.eup %2783  ;;  %2793 = vpow2.f32 %v781_v7 }
 0x1c9   : > { %v853_v19 = vsel %vm606_vm0, %v3258_v48, 0.0 }
 0x1ca   : > { %830 = vadd.xlane.f32.xlu0 %v829_v47  ;;  %827 = vadd.xlane.f32.xlu1 %v826_v51  ;;  %v3260_v18 = vpop.eup %2785 }
 0x1cb   : > { %v856_v57 = vsel %vm606_vm0, %v3260_v18, 0.0 }
 0x1cc   : > { %v3266_v21 = vpop.eup %2787 }
 0x1cd   : > { %v859_v50 = vsel %vm606_vm0, %v3266_v21, 0.0 }
 0x1ce   : > { %836 = vadd.xlane.f32.xlu0 %v835_v55  ;;  %833 = vadd.xlane.f32.xlu1 %v832_v33  ;;  %v3268_v34 = vpop.eup %2789  ;;  %v2738_v33 = vld [vmem:[%s2955_s27 + $0x100] sm:$0xff]  }
 0x1cf   : > { %v862_v41 = vsel %vm606_vm0, %v3268_v34, 0.0 }
 0x1d0   : > { %v3274_v26 = vpop.eup %2791 }
 0x1d1   : > { %v865_v28 = vsel %vm606_vm0, %v3274_v26, 0.0 }
 0x1d2   : > { %842 = vadd.xlane.f32.xlu0 %v841_v3  ;;  %839 = vadd.xlane.f32.xlu1 %v838_v52  ;;  %v3280_v30 = vpop.eup %2793 }
 0x1d3   : > { %v868_v31 = vsel %vm606_vm0, %v3280_v30, 0.0 }
 0x1d6   : > { %848 = vadd.xlane.f32.xlu0 %v847_v2  ;;  %845 = vadd.xlane.f32.xlu1 %v844_v32 }
 0x1da   : > { %854 = vadd.xlane.f32.xlu0 %v853_v19  ;;  %851 = vadd.xlane.f32.xlu1 %v850_v20 }
 0x1de   : > { %860 = vadd.xlane.f32.xlu0 %v859_v50  ;;  %857 = vadd.xlane.f32.xlu1 %v856_v57 }
 0x1e2   : > { %866 = vadd.xlane.f32.xlu0 %v865_v28  ;;  %863 = vadd.xlane.f32.xlu1 %v862_v41  ;;  %v2739_v41 = vld [vmem:[%s2955_s27 + $0x108] sm:$0xff]  }
 0x1e6   : > { %869 = vadd.xlane.f32.xlu1 %v868_v31 }
 0x233   : > { %v801_v39 = vpop.xlane.xlu0 %800 }
 0x234   : > { %2795 = vrcp.f32 %v801_v39 }
 0x237   : > { %v804_v60 = vpop.xlane.xlu1 %803  ;;  %v681_v44 = vpop.xlane.xlu0 %680 }
 0x238   : > { %2797 = vrcp.f32 %v804_v60  ;;  %v727_v45 = vsub.f32 %v3070_v9, %v681_v44 }
 0x23a   : > { %v783_v46 = vmul.f32 1.442695, %v727_v45 }
 0x23b   : > { %v807_v56 = vpop.xlane.xlu0 %806  ;;  %v684_v25 = vpop.xlane.xlu1 %683 }
 0x23c   : > { %2799 = vpow2.f32 %v783_v46  ;;  %v728_v47 = vsub.f32 %v3074_v11, %v684_v25 }
 0x23d   : > { %2801 = vrcp.f32 %v807_v56 }
 0x23e   : > { %v785_v51 = vmul.f32 1.442695, %v728_v47  ;;  %v2796_v42 = vpop.eup %2795 }
 0x23f   : > { %v687_v58 = vpop.xlane.xlu0 %686  ;;  %v810_v29 = vpop.xlane.xlu1 %809  ;;  %v927_v9 = vmul.f32 %v2796_v42, %v3137_v24 }
 0x240   : > { %2803 = vpow2.f32 %v785_v51  ;;  %v729_v1 = vsub.f32 %v3068_v8, %v687_v58  ;;  %v1404_v8 = vsel %vm606_vm0, %v2738_v33, 0  ;;  %v1407_v51 = vsel %vm606_vm0, %v2739_v41, 0 }
 0x241   : > { %2805 = vrcp.f32 %v810_v29 }
 0x242   : > { %v2798_v49 = vpop.eup %2797  ;;  %v787_v55 = vmul.f32 1.442695, %v729_v1 }
 0x243   : > { %v928_v62 = vmul.f32 %v2798_v49, %v3144_v59  ;;  %v813_v4 = vpop.xlane.xlu0 %812  ;;  %v690_v63 = vpop.xlane.xlu1 %689 }
 0x244   : > { %2807 = vpow2.f32 %v787_v55  ;;  %v730_v11 = vsub.f32 %v3072_v10, %v690_v63 }
 0x245   : > { %v3293_v3 = vpack.c.bf16 %v928_v62, %v927_v9  ;;  %2809 = vrcp.f32 %v813_v4 }
 0x246   : > { %v3295_v52 = vpop.eup %2799  ;;  %v789_v7 = vmul.f32 1.442695, %v730_v11 }
 0x247   : > { %2493 = vmatprep.mubr.msk.bf16.mxu1 %vm606_vm0, %v3293_v3  ;;  %2541 = vmatprep.mubr.msk.bf16.mxu0 %vm606_vm0, %v3293_v3  ;;  %v816_v24 = vpop.xlane.xlu1 %815  ;;  %v693_v59 = vpop.xlane.xlu0 %692  ;;  %v871_v2 = vsel %vm606_vm0, %v3295_v52, 0.0 }
 0x248   : > { %2811 = vpow2.f32 %v789_v7  ;;  %v731_v10 = vsub.f32 %v3078_v13, %v693_v59  ;;  %2494 = vmatmul.mubr.msk.bf16.vlgmr.msra.gmra.mrb[0].mxu1 %vm606_vm0, %v3293_v3  ;;  %2542 = vmatmul.mubr.msk.bf16.vlgmr.msra.gmra.mrb[32].mxu0 %vm606_vm0, %v3293_v3  ;;  %v2802_v32 = vpop.eup %2801 }
 0x249   : > { %2813 = vrcp.f32 %v816_v24  ;;  %872 = vadd.xlane.f32.xlu0 %v871_v2  ;;  %2630 = vmatpush1.bf16.xpose.msra.mxu1 %v1404_v8  ;;  %v929_v31 = vmul.f32 %v2802_v32, %v3149_v36 }
 0x24a   : > { %v3309_v19 = vpop.eup %2803  ;;  %v791_v20 = vmul.f32 1.442695, %v731_v10  ;;  %2622 = vmatprep.subr.bf16.mxu1 %v2899_v38  ;;  %1817 = vmatpush1.bf16.xpose.msra.mxu0 %v1404_v8  ;;  %v2741_v10 = vld [vmem:[%s2955_s27 + $0x118] sm:$0xff]  }
 0x24b   : > { %v2806_v50 = vpop.eup %2805  ;;  %v819_v57 = vpop.xlane.xlu0 %818  ;;  %v874_v13 = vsel %vm606_vm0, %v3309_v19, 0.0  ;;  %1818 = vmatprep.subr.bf16.mxu0 %v2899_v38 }
 0x24c   : > { %v696_v28 = vpop.xlane.xlu1 %695  ;;  %v930_v39 = vmul.f32 %v2806_v50, %v3156_v17  ;;  %2815 = vpow2.f32 %v791_v20  ;;  %875 = vadd.xlane.f32.xlu1 %v874_v13 }
 0x24d   : > { %v732_v60 = vsub.f32 %v3082_v15, %v696_v28  ;;  %2817 = vrcp.f32 %v819_v57 }
 0x24e   : > { %v3319_v44 = vpop.eup %2807  ;;  %v3321_v46 = vpack.c.bf16 %v930_v39, %v929_v31  ;;  %v1413_v31 = vsel %vm606_vm0, %v2741_v10, 0 }
 0x24f   : > { %v793_v45 = vmul.f32 1.442695, %v732_v60  ;;  %v699_v56 = vpop.xlane.xlu0 %698  ;;  %v877_v47 = vsel %vm606_vm0, %v3319_v44, 0.0  ;;  %v2810_v36 = vpop.eup %2809 }
 0x250   : > { %v822_v25 = vpop.xlane.xlu1 %821  ;;  %2495 = vmatprep.mubr.msk.bf16.mxu1 %vm606_vm0, %v3321_v46  ;;  %2543 = vmatprep.mubr.msk.bf16.mxu0 %vm606_vm0, %v3321_v46  ;;  %v733_v15 = vsub.f32 %v3076_v12, %v699_v56  ;;  %v2740_v12 = vld [vmem:[%s2955_s27 + $0x110] sm:$0xff]   ;;  %v931_v55 = vmul.f32 %v2810_v36, %v3163_v23 }
 0x251   : > { %2819 = vpow2.f32 %v793_v45  ;;  %2496 = vmatmul.mubr.msk.bf16.gmra.mrb[4].mxu1 %vm606_vm0, %v3321_v46  ;;  %2544 = vmatmul.mubr.msk.bf16.gmra.mrb[36].mxu0 %vm606_vm0, %v3321_v46  ;;  %v1410_v23 = vsel %vm606_vm0, %v2740_v12, 0  ;;  %v2742_v45 = vld [vmem:[%s2955_s27 + $0x120] sm:$0xff]   ;;  %v2743_v12 = vld [vmem:[%s2955_s27 + $0x128] sm:$0xff]  }
 0x252   : > { %2821 = vrcp.f32 %v822_v25  ;;  %v3335_v17 = vpop.eup %2811  ;;  %v795_v58 = vmul.f32 1.442695, %v733_v15  ;;  %878 = vadd.xlane.f32.xlu0 %v877_v47  ;;  %2631 = vmatpush1.bf16.xpose.msra.mxu1 %v1407_v51 }
 0x253   : > { %v2814_v29 = vpop.eup %2813  ;;  %v825_v42 = vpop.xlane.xlu0 %824  ;;  %v880_v49 = vsel %vm606_vm0, %v3335_v17, 0.0  ;;  %2623 = vmatprep.subr.bf16.mxu1 %v2899_v38  ;;  %1819 = vmatpush1.bf16.xpose.msra.mxu0 %v1407_v51 }
 0x254   : > { %v702_v1 = vpop.xlane.xlu1 %701  ;;  %v932_v33 = vmul.f32 %v2814_v29, %v3171_v37  ;;  %2823 = vpow2.f32 %v795_v58  ;;  %881 = vadd.xlane.f32.xlu1 %v880_v49  ;;  %1820 = vmatprep.subr.bf16.mxu0 %v2899_v38 }
 0x255   : > { %v734_v9 = vsub.f32 %v3080_v14, %v702_v1  ;;  %2825 = vrcp.f32 %v825_v42  ;;  %v1416_v1 = vsel %vm606_vm0, %v2742_v45, 0 }
 0x256   : > { %v3345_v62 = vpop.eup %2815  ;;  %v3347_v63 = vpack.c.bf16 %v932_v33, %v931_v55 }
 0x257   : > { %v797_v4 = vmul.f32 1.442695, %v734_v9  ;;  %v883_v7 = vsel %vm606_vm0, %v3345_v62, 0.0  ;;  %v831_v14 = vpop.xlane.xlu0 %830  ;;  %v2818_v37 = vpop.eup %2817 }
 0x258   : > { %v828_v11 = vpop.xlane.xlu1 %827  ;;  %2497 = vmatprep.mubr.msk.bf16.mxu1 %vm606_vm0, %v3347_v63  ;;  %2545 = vmatprep.mubr.msk.bf16.mxu0 %vm606_vm0, %v3347_v63  ;;  %v933_v32 = vmul.f32 %v2818_v37, %v3187_v27 }
 0x259   : > { %2827 = vpow2.f32 %v797_v4  ;;  %2498 = vmatmul.mubr.msk.bf16.gmra.mrb[8].mxu1 %vm606_vm0, %v3347_v63  ;;  %2546 = vmatmul.mubr.msk.bf16.gmra.mrb[40].mxu0 %vm606_vm0, %v3347_v63  ;;  %v1419_v4 = vsel %vm606_vm0, %v2743_v12, 0 }
 0x25a   : > { %2829 = vrcp.f32 %v828_v11  ;;  %884 = vadd.xlane.f32.xlu0 %v883_v7  ;;  %2632 = vmatpush1.bf16.xpose.msra.mxu1 %v1410_v23 }
 0x25b   : > { %v3360_v8 = vpop.eup %2819  ;;  %2831 = vrcp.f32 %v831_v14  ;;  %2624 = vmatprep.subr.bf16.mxu1 %v2899_v38  ;;  %1821 = vmatpush1.bf16.xpose.msra.mxu0 %v1410_v23  ;;  %v837_v28 = vpop.xlane.xlu0 %836  ;;  %v2744_v23 = vld [vmem:[%s2955_s27 + $0x130] sm:$0xff]  }
 0x25c   : > { %v2822_v24 = vpop.eup %2821  ;;  %v834_v59 = vpop.xlane.xlu1 %833  ;;  %v886_v2 = vsel %vm606_vm0, %v3360_v8, 0.0  ;;  %1822 = vmatprep.subr.bf16.mxu0 %v2899_v38 }
 0x25d   : > { %v934_v20 = vmul.f32 %v2822_v24, %v3195_v5  ;;  %887 = vadd.xlane.f32.xlu1 %v886_v2  ;;  %2833 = vrcp.f32 %v834_v59  ;;  %v1422_v59 = vsel %vm606_vm0, %v2744_v23, 0 }
 0x25e   : > { %v3369_v50 = vpop.eup %2823 }
 0x25f   : > { %v3371_v57 = vpack.c.bf16 %v934_v20, %v933_v32  ;;  %v889_v41 = vsel %vm606_vm0, %v3369_v50, 0.0  ;;  %v2826_v27 = vpop.eup %2825  ;;  %v843_v36 = vpop.xlane.xlu0 %842  ;;  %v2745_v32 = vld [vmem:[%s2955_s27 + $0x138] sm:$0xff]  }
 0x260   : > { %v840_v13 = vpop.xlane.xlu1 %839  ;;  %890 = vadd.xlane.f32.xlu0 %v889_v41  ;;  %v935_v25 = vmul.f32 %v2826_v27, %v3210_v22  ;;  %v1425_v41 = vsel %vm606_vm0, %v2745_v32, 0 }
 0x261   : > { %2499 = vmatprep.mubr.msk.bf16.mxu1 %vm606_vm0, %v3371_v57  ;;  %2547 = vmatprep.mubr.msk.bf16.mxu0 %vm606_vm0, %v3371_v57  ;;  %2835 = vrcp.f32 %v840_v13 }
 0x262   : > { %2500 = vmatmul.mubr.msk.bf16.gmra.mrb[12].mxu1 %vm606_vm0, %v3371_v57  ;;  %2837 = vrcp.f32 %v837_v28  ;;  %2548 = vmatmul.mubr.msk.bf16.gmra.mrb[44].mxu0 %vm606_vm0, %v3371_v57 }
 0x263   : > { %v3382_v5 = vpop.eup %2827  ;;  %2633 = vmatpush1.bf16.xpose.msra.mxu1 %v1413_v31  ;;  %1823 = vmatpush1.bf16.xpose.msra.mxu0 %v1413_v31  ;;  %v849_v33 = vpop.xlane.xlu0 %848 }
 0x264   : > { %v892_v39 = vsel %vm606_vm0, %v3382_v5, 0.0  ;;  %2625 = vmatprep.subr.bf16.mxu1 %v2899_v38  ;;  %v2830_v60 = vpop.eup %2829  ;;  %1824 = vmatprep.subr.bf16.mxu0 %v2899_v38  ;;  %v846_v51 = vpop.xlane.xlu1 %845 }
 0x265   : > { %893 = vadd.xlane.f32.xlu1 %v892_v39  ;;  %v2832_v56 = vpop.eup %2831  ;;  %v936_v47 = vmul.f32 %v2830_v60, %v3215_v35  ;;  %2839 = vrcp.f32 %v846_v51  ;;  %v2746_v39 = vld [vmem:[%s2955_s27 + $0x140] ss:$0 sps:$4 sm:$0xff]  }
 0x266   : > { %v937_v29 = vmul.f32 %v2832_v56, %v3221_v43  ;;  %2841 = vrcp.f32 %v843_v36 }
 0x267   : > { %v2834_v15 = vpop.eup %2833  ;;  %v3393_v58 = vpack.c.bf16 %v936_v47, %v935_v25  ;;  %v855_v37 = vpop.xlane.xlu0 %854  ;;  %v1428_v25 = vsel %vm606_vm0, %v2746_v39, 0 }
 0x268   : > { %v938_v42 = vmul.f32 %v2834_v15, %v3225_v40  ;;  %v852_v49 = vpop.xlane.xlu1 %851 }
 0x269   : > { %2501 = vmatprep.mubr.msk.bf16.mxu1 %vm606_vm0, %v3393_v58  ;;  %2549 = vmatprep.mubr.msk.bf16.mxu0 %vm606_vm0, %v3393_v58  ;;  %2843 = vrcp.f32 %v852_v49 }
 0x26a   : > { %2502 = vmatmul.mubr.msk.bf16.gmra.mrb[16].mxu1 %vm606_vm0, %v3393_v58  ;;  %2550 = vmatmul.mubr.msk.bf16.gmra.mrb[48].mxu0 %vm606_vm0, %v3393_v58  ;;  %v3406_v22 = vpack.c.bf16 %v938_v42, %v937_v29  ;;  %2845 = vrcp.f32 %v849_v33 }
 0x26b   : > { %v2836_v35 = vpop.eup %2835  ;;  %2634 = vmatpush1.bf16.xpose.msra.mxu1 %v1416_v1  ;;  %1825 = vmatpush1.bf16.xpose.msra.mxu0 %v1416_v1  ;;  %v861_v28 = vpop.xlane.xlu0 %860 }
 0x26c   : > { %v2838_v43 = vpop.eup %2837  ;;  %2503 = vmatprep.mubr.msk.bf16.mxu1 %vm606_vm0, %v3406_v22  ;;  %2551 = vmatprep.mubr.msk.bf16.mxu0 %vm606_vm0, %v3406_v22  ;;  %v940_v40 = vmul.f32 %v2836_v35, %v3235_v54  ;;  %v858_v7 = vpop.xlane.xlu1 %857 }
 0x26d   : > { %2626 = vmatprep.subr.bf16.mxu1 %v2899_v38  ;;  %1826 = vmatprep.subr.bf16.mxu0 %v2899_v38  ;;  %v939_v55 = vmul.f32 %v2838_v43, %v3231_v53  ;;  %2847 = vrcp.f32 %v858_v7 }
 0x26e   : > { %2849 = vrcp.f32 %v855_v37 }
 0x26f   : > { %v3417_v9 = vpack.c.bf16 %v940_v40, %v939_v55  ;;  %v2840_v11 = vpop.eup %2839  ;;  %v867_v45 = vpop.xlane.xlu0 %866 }
 0x270   : > { %v2842_v53 = vpop.eup %2841  ;;  %v942_v54 = vmul.f32 %v2840_v11, %v3244_v0  ;;  %v864_v10 = vpop.xlane.xlu1 %863 }
 0x271   : > { %v941_v14 = vmul.f32 %v2842_v53, %v3241_v61  ;;  %2851 = vrcp.f32 %v864_v10 }
 0x272   : > { %2504 = vmatmul.mubr.msk.bf16.gmra.mrb[20].mxu1 %vm606_vm0, %v3406_v22  ;;  %2552 = vmatmul.mubr.msk.bf16.gmra.mrb[52].mxu0 %vm606_vm0, %v3406_v22  ;;  %2853 = vrcp.f32 %v861_v28 }
 0x273   : > { %2505 = vmatprep.mubr.msk.bf16.mxu1 %vm606_vm0, %v3417_v9  ;;  %2553 = vmatprep.mubr.msk.bf16.mxu0 %vm606_vm0, %v3417_v9  ;;  %v3433_v24 = vpack.c.bf16 %v942_v54, %v941_v14  ;;  %v2844_v2 = vpop.eup %2843 }
 0x274   : > { %2635 = vmatpush1.bf16.xpose.msra.mxu1 %v1419_v4  ;;  %1827 = vmatpush1.bf16.xpose.msra.mxu0 %v1419_v4  ;;  %v2846_v61 = vpop.eup %2845  ;;  %v944_v0 = vmul.f32 %v2844_v2, %v3252_v16  ;;  %v870_v27 = vpop.xlane.xlu1 %869 }
 0x275   : > { %2627 = vmatprep.subr.bf16.mxu1 %v2899_v38  ;;  %1828 = vmatprep.subr.bf16.mxu0 %v2899_v38  ;;  %v943_v20 = vmul.f32 %v2846_v61, %v3250_v6  ;;  %2855 = vrcp.f32 %v870_v27 }
 0x276   : > { %2857 = vrcp.f32 %v867_v45 }
 0x277   : > { %v3449_v13 = vpack.c.bf16 %v944_v0, %v943_v20  ;;  %v2848_v31 = vpop.eup %2847 }
 0x278   : > { %v2850_v6 = vpop.eup %2849  ;;  %v946_v16 = vmul.f32 %v2848_v31, %v3260_v18 }
 0x279   : > { %v945_v60 = vmul.f32 %v2850_v6, %v3258_v48 }
 0x27a   : > { %2506 = vmatmul.mubr.msk.bf16.gmra.mrb[24].mxu1 %vm606_vm0, %v3417_v9  ;;  %2554 = vmatmul.mubr.msk.bf16.gmra.mrb[56].mxu0 %vm606_vm0, %v3417_v9 }
 0x27b   : > { %2507 = vmatprep.mubr.msk.bf16.mxu1 %vm606_vm0, %v3433_v24  ;;  %2555 = vmatprep.mubr.msk.bf16.mxu0 %vm606_vm0, %v3433_v24  ;;  %v3465_v56 = vpack.c.bf16 %v946_v16, %v945_v60  ;;  %v2852_v47 = vpop.eup %2851 }
 0x27c   : > { %2636 = vmatpush1.bf16.xpose.msra.mxu1 %v1422_v59  ;;  %1829 = vmatpush1.bf16.xpose.msra.mxu0 %v1422_v59  ;;  %v2854_v48 = vpop.eup %2853  ;;  %v948_v18 = vmul.f32 %v2852_v47, %v3268_v34 }
 0x27d   : > { %2628 = vmatprep.subr.bf16.mxu1 %v2899_v38  ;;  %1830 = vmatprep.subr.bf16.mxu0 %v2899_v38  ;;  %v947_v51 = vmul.f32 %v2854_v48, %v3266_v21 }
 0x27f   : > { %v3478_v15 = vpack.c.bf16 %v948_v18, %v947_v51  ;;  %v2856_v36 = vpop.eup %2855 }
 0x280   : > { %v2858_v29 = vpop.eup %2857  ;;  %v950_v34 = vmul.f32 %v2856_v36, %v3280_v30 }
 0x281   : > { %v949_v21 = vmul.f32 %v2858_v29, %v3274_v26 }
 0x282   : > { %2508 = vmatmul.mubr.msk.bf16.gmra.mrb[28].mxu1 %vm606_vm0, %v3433_v24  ;;  %2556 = vmatmul.mubr.msk.bf16.gmra.mrb[60].mxu0 %vm606_vm0, %v3433_v24 }
 0x283   : > { %2509 = vmatprep.mubr.msk.bf16.mxu1 %vm606_vm0, %v3449_v13  ;;  %2557 = vmatprep.mubr.msk.bf16.mxu0 %vm606_vm0, %v3449_v13  ;;  %v3490_v42 = vpack.c.bf16 %v950_v34, %v949_v21 }
 0x284   : > { %2637 = vmatpush1.bf16.xpose.msra.mxu1 %v1425_v41  ;;  %1831 = vmatpush1.bf16.xpose.msra.mxu0 %v1425_v41 }
 0x285   : > { %2629 = vmatprep.subr.bf16.mxu1 %v2899_v38  ;;  %1832 = vmatprep.subr.bf16.mxu0 %v2899_v38 }
 0x28a   : > { %2510 = vmatmul.mubr.msk.bf16.gmra.mrb[32].mxu1 %vm606_vm0, %v3449_v13  ;;  %2558 = vmatmul.mubr.msk.bf16.gmra.mrb[64].mxu0 %vm606_vm0, %v3449_v13 }
 0x28b   : > { %2511 = vmatprep.mubr.msk.bf16.mxu1 %vm606_vm0, %v3465_v56  ;;  %2559 = vmatprep.mubr.msk.bf16.mxu0 %vm606_vm0, %v3465_v56 }
 0x28c   : > { %2638 = vmatpush1.bf16.xpose.msra.mxu1 %v1428_v25  ;;  %1833 = vmatpush1.bf16.xpose.msra.mxu0 %v1428_v25 }
 0x292   : > { %2512 = vmatmul.mubr.msk.bf16.gmra.mrb[36].mxu1 %vm606_vm0, %v3465_v56  ;;  %2560 = vmatmul.mubr.msk.bf16.gmra.mrb[68].mxu0 %vm606_vm0, %v3465_v56 }
 0x293   : > { %2513 = vmatprep.mubr.msk.bf16.mxu1 %vm606_vm0, %v3478_v15  ;;  %2561 = vmatprep.mubr.msk.bf16.mxu0 %vm606_vm0, %v3478_v15 }
 0x29a   : > { %2514 = vmatmul.mubr.msk.bf16.gmra.mrb[40].mxu1 %vm606_vm0, %v3478_v15  ;;  %2562 = vmatmul.mubr.msk.bf16.gmra.mrb[72].mxu0 %vm606_vm0, %v3478_v15 }
 0x29b   : > { %2515 = vmatprep.mubr.msk.bf16.mxu1 %vm606_vm0, %v3490_v42  ;;  %2563 = vmatprep.mubr.msk.bf16.mxu0 %vm606_vm0, %v3490_v42 }
 0x2a2   : > { %2516 = vmatmul.mubr.msk.bf16.gmra.mrb[44].mxu1 %vm606_vm0, %v3490_v42  ;;  %2564 = vmatmul.mubr.msk.bf16.gmra.mrb[76].mxu0 %vm606_vm0, %v3490_v42 }
 0x2d6   : > { %v873_v26 = vpop.xlane.xlu0 %872 }
 0x2d7   : > { %2859 = vrcp.f32 %v873_v26 }
 0x2d9   : > { %v876_v30 = vpop.xlane.xlu1 %875 }
 0x2da   : > { %2861 = vrcp.f32 %v876_v30 }
 0x2df   : > { %v879_v1 = vpop.xlane.xlu0 %878 }
 0x2e0   : > { %2863 = vrcp.f32 %v879_v1 }
 0x2e1   : > { %v882_v35 = vpop.xlane.xlu1 %881  ;;  %v2860_v43 = vpop.eup %2859 }
 0x2e2   : > { %2865 = vrcp.f32 %v882_v35  ;;  %v951_v49 = vmul.f32 %v2860_v43, %v3295_v52 }
 0x2e4   : > { %v2862_v40 = vpop.eup %2861 }
 0x2e5   : > { %v952_v12 = vmul.f32 %v2862_v40, %v3309_v19 }
 0x2e7   : > { %v885_v55 = vpop.xlane.xlu0 %884  ;;  %v3506_v33 = vpack.c.bf16 %v952_v12, %v951_v49 }
 0x2e8   : > { %2867 = vrcp.f32 %v885_v55 }
 0x2e9   : > { %2517 = vmatprep.mubr.msk.bf16.mxu1 %vm606_vm0, %v3506_v33  ;;  %2565 = vmatprep.mubr.msk.bf16.mxu0 %vm606_vm0, %v3506_v33 }
 0x2ea   : > { %v888_v4 = vpop.xlane.xlu1 %887  ;;  %v2864_v11 = vpop.eup %2863  ;;  %2518 = vmatmul.mubr.msk.bf16.gmra.mrb[48].mxu1 %vm606_vm0, %v3506_v33  ;;  %2566 = vmatmul.mubr.msk.bf16.gmra.mrb[80].mxu0 %vm606_vm0, %v3506_v33 }
 0x2eb   : > { %2869 = vrcp.f32 %v888_v4  ;;  %v953_v19 = vmul.f32 %v2864_v11, %v3319_v44 }
 0x2ec   : > { %v2866_v52 = vpop.eup %2865 }
 0x2ed   : > { %v954_v53 = vmul.f32 %v2866_v52, %v3335_v17  ;;  %v891_v54 = vpop.xlane.xlu0 %890 }
 0x2ee   : > { %2871 = vrcp.f32 %v891_v54 }
 0x2ef   : > { %v3518_v7 = vpack.c.bf16 %v954_v53, %v953_v19 }
 0x2f1   : > { %2519 = vmatprep.mubr.msk.bf16.mxu1 %vm606_vm0, %v3518_v7  ;;  %2567 = vmatprep.mubr.msk.bf16.mxu0 %vm606_vm0, %v3518_v7 }
 0x2f2   : > { %v894_v23 = vpop.xlane.xlu1 %893  ;;  %v2868_v14 = vpop.eup %2867  ;;  %2520 = vmatmul.mubr.msk.bf16.gmra.mrb[52].mxu1 %vm606_vm0, %v3518_v7  ;;  %2568 = vmatmul.mubr.msk.bf16.gmra.mrb[84].mxu0 %vm606_vm0, %v3518_v7 }
 0x2f3   : > { %2873 = vrcp.f32 %v894_v23  ;;  %v955_v17 = vmul.f32 %v2868_v14, %v3345_v62 }
 0x2f5   : > { %v2870_v44 = vpop.eup %2869 }
 0x2f6   : > { %v956_v37 = vmul.f32 %v2870_v44, %v3360_v8 }
 0x2f8   : > { %v3530_v59 = vpack.c.bf16 %v956_v37, %v955_v17  ;;  %v2872_v2 = vpop.eup %2871 }
 0x2f9   : > { %v957_v62 = vmul.f32 %v2872_v2, %v3369_v50 }
 0x2fa   : > { %2521 = vmatprep.mubr.msk.bf16.mxu1 %vm606_vm0, %v3530_v59  ;;  %2569 = vmatprep.mubr.msk.bf16.mxu0 %vm606_vm0, %v3530_v59 }
 0x2fb   : > { %2522 = vmatmul.mubr.msk.bf16.gmra.mrb[56].mxu1 %vm606_vm0, %v3530_v59  ;;  %2570 = vmatmul.mubr.msk.bf16.gmra.mrb[88].mxu0 %vm606_vm0, %v3530_v59 }
 0x2fd   : > { %v2874_v61 = vpop.eup %2873 }
 0x2fe   : > { %v958_v8 = vmul.f32 %v2874_v61, %v3382_v5 }
 0x300   : > { %v3542_v0 = vpack.c.bf16 %v958_v8, %v957_v62 }
 0x302   : > { %2523 = vmatprep.mubr.msk.bf16.mxu1 %vm606_vm0, %v3542_v0  ;;  %2571 = vmatprep.mubr.msk.bf16.mxu0 %vm606_vm0, %v3542_v0 }
 0x303   : > { %2524 = vmatmul.mubr.msk.bf16.gmra.mrb[60].mxu1 %vm606_vm0, %v3542_v0  ;;  %2572 = vmatmul.mubr.msk.bf16.gmra.mrb[92].mxu0 %vm606_vm0, %v3542_v0 }
 0x304   : > { %1848 = vmatprep.mubr.bf16.mxu0 %v2899_v38  ;;  %1908 = vmatprep.mubr.bf16.mxu1 %v2899_v38 }
 0x30b   : > { %2433 = vmatmul.mubr.msk.bf16.vlgmr.msra.gmra.mrb[96].mxu0 %vm606_vm0, %v3293_v3  ;;  %2439 = vmatmul.mubr.msk.bf16.vlgmr.msra.gmra.mrb[64].mxu1 %vm606_vm0, %v3417_v9 }
 0x30c   : > { %1858 = vmatprep.mubr.bf16.mxu0 %v2899_v38  ;;  %1918 = vmatprep.mubr.bf16.mxu1 %v2899_v38 }
 0x313   : > { %2434 = vmatmul.mubr.msk.bf16.gmra.mrb[100].mxu0 %vm606_vm0, %v3321_v46  ;;  %2440 = vmatmul.mubr.msk.bf16.gmra.mrb[68].mxu1 %vm606_vm0, %v3433_v24 }
 0x314   : > { %1868 = vmatprep.mubr.bf16.mxu0 %v2899_v38  ;;  %1928 = vmatprep.mubr.bf16.mxu1 %v2899_v38 }
 0x31b   : > { %2435 = vmatmul.mubr.msk.bf16.gmra.mrb[104].mxu0 %vm606_vm0, %v3347_v63  ;;  %2441 = vmatmul.mubr.msk.bf16.gmra.mrb[72].mxu1 %vm606_vm0, %v3449_v13  ;;  %v1464_v3 = vpop.f32.mrb[0].mxu1  ;;  %v1657_v46 = vpop.f32.mrb[32].mxu0 }
 0x31c   : > { %1878 = vmatprep.mubr.bf16.mxu0 %v2899_v38  ;;  %1938 = vmatprep.mubr.bf16.mxu1 %v2899_v38  ;;  %2009 = vst [vmem:[%s3570_s4] sm:$0xff] %v1464_v3  ;;  %2011 = vst [vmem:[%s3570_s4 + $0x10] sm:$0xff] %v1657_v46  ;;  %v1466_v50 = vpop.f32.mrb[1].mxu1  ;;  %v1659_v5 = vpop.f32.mrb[33].mxu0 }
 0x31d   : > { %2010 = vst [vmem:[%s3570_s4 + $0x8] sm:$0xff] %v1466_v50  ;;  %2012 = vst [vmem:[%s3570_s4 + $0x18] sm:$0xff] %v1659_v5  ;;  %v1468_v63 = vpop.f32.mrb[2].mxu1  ;;  %v1661_v9 = vpop.f32.mrb[34].mxu0 }
 0x31e   : > { %2016 = vst [vmem:[%s3570_s4 + $0x30] sm:$0xff] %v1468_v63  ;;  %2018 = vst [vmem:[%s3570_s4 + $0x40] sm:$0xff] %v1661_v9  ;;  %v1470_v24 = vpop.f32.mrb[3].mxu1  ;;  %v1663_v10 = vpop.f32.mrb[35].mxu0 }
 0x31f   : > { %2017 = vst [vmem:[%s3570_s4 + $0x38] sm:$0xff] %v1470_v24  ;;  %2019 = vst [vmem:[%s3570_s4 + $0x48] sm:$0xff] %v1663_v10 }
 0x323   : > { %2436 = vmatmul.mubr.msk.bf16.gmra.mrb[108].mxu0 %vm606_vm0, %v3371_v57  ;;  %2442 = vmatmul.mubr.msk.bf16.gmra.mrb[76].mxu1 %vm606_vm0, %v3465_v56 }
 0x324   : > { %1888 = vmatprep.mubr.bf16.mxu0 %v2899_v38  ;;  %1948 = vmatprep.mubr.bf16.mxu1 %v2899_v38  ;;  %v1474_v32 = vpop.f32.mrb[4].mxu1  ;;  %v1667_v20 = vpop.f32.mrb[36].mxu0 }
 0x325   : > { %2022 = vst [vmem:[%s3570_s4 + $0x60] sm:$0xff] %v1474_v32  ;;  %2024 = vst [vmem:[%s3570_s4 + $0x70] sm:$0xff] %v1667_v20  ;;  %v1476_v28 = vpop.f32.mrb[5].mxu1  ;;  %v1669_v13 = vpop.f32.mrb[37].mxu0 }
 0x326   : > { %2023 = vst [vmem:[%s3570_s4 + $0x68] sm:$0xff] %v1476_v28  ;;  %2025 = vst [vmem:[%s3570_s4 + $0x78] sm:$0xff] %v1669_v13  ;;  %v1478_v57 = vpop.f32.mrb[6].mxu1  ;;  %v1671_v41 = vpop.f32.mrb[38].mxu0 }
 0x327   : > { %2028 = vst [vmem:[%s3570_s4 + $0x90] sm:$0xff] %v1478_v57  ;;  %2030 = vst [vmem:[%s3570_s4 + $0xa0] sm:$0xff] %v1671_v41  ;;  %v1480_v31 = vpop.f32.mrb[7].mxu1  ;;  %v1673_v6 = vpop.f32.mrb[39].mxu0 }
 0x328   : > { %2029 = vst [vmem:[%s3570_s4 + $0x98] sm:$0xff] %v1480_v31  ;;  %2031 = vst [vmem:[%s3570_s4 + $0xa8] sm:$0xff] %v1673_v6 }
 0x32b   : > { %2437 = vmatmul.mubr.msk.bf16.gmra.mrb[112].mxu0 %vm606_vm0, %v3393_v58  ;;  %2443 = vmatmul.mubr.msk.bf16.gmra.mrb[80].mxu1 %vm606_vm0, %v3478_v15 }
 0x32c   : > { %1898 = vmatprep.mubr.bf16.mxu0 %v2899_v38  ;;  %1958 = vmatprep.mubr.bf16.mxu1 %v2899_v38  ;;  %v1484_v16 = vpop.f32.mrb[8].mxu1  ;;  %v1677_v27 = vpop.f32.mrb[40].mxu0 }
 0x32d   : > { %2034 = vst [vmem:[%s3570_s4 + $0xc0] sm:$0xff] %v1484_v16  ;;  %2036 = vst [vmem:[%s3570_s4 + $0xd0] sm:$0xff] %v1677_v27  ;;  %v1486_v39 = vpop.f32.mrb[9].mxu1  ;;  %v1679_v60 = vpop.f32.mrb[41].mxu0 }
 0x32e   : > { %2035 = vst [vmem:[%s3570_s4 + $0xc8] sm:$0xff] %v1486_v39  ;;  %2037 = vst [vmem:[%s3570_s4 + $0xd8] sm:$0xff] %v1679_v60  ;;  %v1488_v58 = vpop.f32.mrb[10].mxu1  ;;  %v1681_v45 = vpop.f32.mrb[42].mxu0 }
 0x32f   : > { %2040 = vst [vmem:[%s3570_s4 + $0xf0] sm:$0xff] %v1488_v58  ;;  %2042 = vst [vmem:[%s3570_s4 + $0x100] sm:$0xff] %v1681_v45  ;;  %v1490_v56 = vpop.f32.mrb[11].mxu1  ;;  %v1683_v25 = vpop.f32.mrb[43].mxu0 }
 0x330   : > { %2041 = vst [vmem:[%s3570_s4 + $0xf8] sm:$0xff] %v1490_v56  ;;  %2043 = vst [vmem:[%s3570_s4 + $0x108] sm:$0xff] %v1683_v25 }
 0x333   : > { %2438 = vmatmul.mubr.msk.bf16.gmra.mrb[116].mxu0 %vm606_vm0, %v3406_v22  ;;  %2444 = vmatmul.mubr.msk.bf16.gmra.mrb[84].mxu1 %vm606_vm0, %v3490_v42 }
 0x334   : > { %1968 = vmatprep.mubr.bf16.mxu1 %v2899_v38 }
 0x335   : > { %v1494_v47 = vpop.f32.mrb[12].mxu1  ;;  %v1687_v48 = vpop.f32.mrb[44].mxu0 }
 0x336   : > { %2046 = vst [vmem:[%s3570_s4 + $0x120] sm:$0xff] %v1494_v47  ;;  %v1496_v18 = vpop.f32.mrb[13].mxu1  ;;  %2048 = vst [vmem:[%s3570_s4 + $0x130] sm:$0xff] %v1687_v48  ;;  %v1689_v51 = vpop.f32.mrb[45].mxu0 }
 0x337   : > { %2047 = vst [vmem:[%s3570_s4 + $0x128] sm:$0xff] %v1496_v18  ;;  %v1498_v15 = vpop.f32.mrb[14].mxu1  ;;  %2049 = vst [vmem:[%s3570_s4 + $0x138] sm:$0xff] %v1689_v51  ;;  %v1691_v22 = vpop.f32.mrb[46].mxu0 }
 0x338   : > { %2052 = vst [vmem:[%s3570_s4 + $0x150] sm:$0xff] %v1498_v15  ;;  %v1500_v36 = vpop.f32.mrb[15].mxu1  ;;  %2054 = vst [vmem:[%s3570_s4 + $0x160] sm:$0xff] %v1691_v22  ;;  %v1693_v29 = vpop.f32.mrb[47].mxu0 }
 0x339   : > { %2053 = vst [vmem:[%s3570_s4 + $0x158] sm:$0xff] %v1500_v36  ;;  %2055 = vst [vmem:[%s3570_s4 + $0x168] sm:$0xff] %v1693_v29 }
 0x33b   : > { %2445 = vmatmul.mubr.msk.bf16.gmra.mrb[88].mxu1 %vm606_vm0, %v3506_v33 }
 0x33c   : > { %1978 = vmatprep.mubr.bf16.mxu1 %v2899_v38 }
 0x33d   : > { %v1504_v34 = vpop.f32.mrb[16].mxu1  ;;  %v1697_v21 = vpop.f32.mrb[48].mxu0 }
 0x33e   : > { %2058 = vst [vmem:[%s3570_s4 + $0x180] sm:$0xff] %v1504_v34  ;;  %2060 = vst [vmem:[%s3570_s4 + $0x190] sm:$0xff] %v1697_v21  ;;  %v1506_v42 = vpop.f32.mrb[17].mxu1  ;;  %v1699_v26 = vpop.f32.mrb[49].mxu0 }
 0x33f   : > { %2059 = vst [vmem:[%s3570_s4 + $0x188] sm:$0xff] %v1506_v42  ;;  %2061 = vst [vmem:[%s3570_s4 + $0x198] sm:$0xff] %v1699_v26  ;;  %v1508_v30 = vpop.f32.mrb[18].mxu1  ;;  %v1701_v1 = vpop.f32.mrb[50].mxu0 }
 0x340   : > { %2064 = vst [vmem:[%s3570_s4 + $0x1b0] sm:$0xff] %v1508_v30  ;;  %2066 = vst [vmem:[%s3570_s4 + $0x1c0] sm:$0xff] %v1701_v1  ;;  %v1510_v35 = vpop.f32.mrb[19].mxu1  ;;  %v1703_v43 = vpop.f32.mrb[51].mxu0 }
 0x341   : > { %2065 = vst [vmem:[%s3570_s4 + $0x1b8] sm:$0xff] %v1510_v35  ;;  %2067 = vst [vmem:[%s3570_s4 + $0x1c8] sm:$0xff] %v1703_v43 }
 0x343   : > { %2446 = vmatmul.mubr.msk.bf16.gmra.mrb[92].mxu1 %vm606_vm0, %v3518_v7 }
 0x344   : > { %1988 = vmatprep.mubr.bf16.mxu1 %v2899_v38 }
 0x345   : > { %v1514_v40 = vpop.f32.mrb[20].mxu1  ;;  %v1707_v49 = vpop.f32.mrb[52].mxu0 }
 0x346   : > { %2070 = vst [vmem:[%s3570_s4 + $0x1e0] sm:$0xff] %v1514_v40  ;;  %2072 = vst [vmem:[%s3570_s4 + $0x1f0] sm:$0xff] %v1707_v49  ;;  %v1516_v12 = vpop.f32.mrb[21].mxu1  ;;  %v1709_v55 = vpop.f32.mrb[53].mxu0 }
 0x347   : > { %2071 = vst [vmem:[%s3570_s4 + $0x1e8] sm:$0xff] %v1516_v12  ;;  %2073 = vst [vmem:[%s3570_s4 + $0x1f8] sm:$0xff] %v1709_v55  ;;  %v1518_v33 = vpop.f32.mrb[22].mxu1  ;;  %v1711_v4 = vpop.f32.mrb[54].mxu0 }
 0x348   : > { %2076 = vst [vmem:[%s3570_s4 + $0x210] sm:$0xff] %v1518_v33  ;;  %2078 = vst [vmem:[%s3570_s4 + $0x220] sm:$0xff] %v1711_v4  ;;  %v1520_v11 = vpop.f32.mrb[23].mxu1  ;;  %v1713_v52 = vpop.f32.mrb[55].mxu0 }
 0x349   : > { %2077 = vst [vmem:[%s3570_s4 + $0x218] sm:$0xff] %v1520_v11  ;;  %2079 = vst [vmem:[%s3570_s4 + $0x228] sm:$0xff] %v1713_v52 }
 0x34b   : > { %2447 = vmatmul.mubr.msk.bf16.gmra.mrb[96].mxu1 %vm606_vm0, %v3530_v59 }
 0x34c   : > { %1998 = vmatprep.mubr.bf16.mxu1 %v2899_v38 }
 0x34d   : > { %v1524_v19 = vpop.f32.mrb[24].mxu1  ;;  %v1717_v53 = vpop.f32.mrb[56].mxu0 }
 0x34e   : > { %2082 = vst [vmem:[%s3570_s4 + $0x240] sm:$0xff] %v1524_v19  ;;  %2084 = vst [vmem:[%s3570_s4 + $0x250] sm:$0xff] %v1717_v53  ;;  %v1526_v54 = vpop.f32.mrb[25].mxu1  ;;  %v1719_v7 = vpop.f32.mrb[57].mxu0 }
 0x34f   : > { %2083 = vst [vmem:[%s3570_s4 + $0x248] sm:$0xff] %v1526_v54  ;;  %2085 = vst [vmem:[%s3570_s4 + $0x258] sm:$0xff] %v1719_v7  ;;  %v1528_v23 = vpop.f32.mrb[26].mxu1  ;;  %v1721_v14 = vpop.f32.mrb[58].mxu0 }
 0x350   : > { %2088 = vst [vmem:[%s3570_s4 + $0x270] sm:$0xff] %v1528_v23  ;;  %2090 = vst [vmem:[%s3570_s4 + $0x280] sm:$0xff] %v1721_v14  ;;  %v1530_v44 = vpop.f32.mrb[27].mxu1  ;;  %v1723_v38 = vpop.f32.mrb[59].mxu0 }
 0x351   : > { %2089 = vst [vmem:[%s3570_s4 + $0x278] sm:$0xff] %v1530_v44  ;;  %2091 = vst [vmem:[%s3570_s4 + $0x288] sm:$0xff] %v1723_v38 }
 0x353   : > { %2448 = vmatmul.mubr.msk.bf16.gmra.mrb[100].mxu1 %vm606_vm0, %v3542_v0 }
 0x355   : > { %v1534_v17 = vpop.f32.mrb[28].mxu1  ;;  %v1727_v37 = vpop.f32.mrb[60].mxu0 }
 0x356   : > { %2094 = vst [vmem:[%s3570_s4 + $0x2a0] sm:$0xff] %v1534_v17  ;;  %2096 = vst [vmem:[%s3570_s4 + $0x2b0] sm:$0xff] %v1727_v37  ;;  %v1536_v59 = vpop.f32.mrb[29].mxu1  ;;  %v1729_v2 = vpop.f32.mrb[61].mxu0 }
 0x357   : > { %2095 = vst [vmem:[%s3570_s4 + $0x2a8] sm:$0xff] %v1536_v59  ;;  %2097 = vst [vmem:[%s3570_s4 + $0x2b8] sm:$0xff] %v1729_v2  ;;  %v1538_v61 = vpop.f32.mrb[30].mxu1  ;;  %v1731_v62 = vpop.f32.mrb[62].mxu0 }
 0x358   : > { %2100 = vst [vmem:[%s3570_s4 + $0x2d0] sm:$0xff] %v1538_v61  ;;  %2102 = vst [vmem:[%s3570_s4 + $0x2e0] sm:$0xff] %v1731_v62  ;;  %v1540_v8 = vpop.f32.mrb[31].mxu1  ;;  %v1733_v0 = vpop.f32.mrb[63].mxu0 }
 0x359   : > { %2101 = vst [vmem:[%s3570_s4 + $0x2d8] sm:$0xff] %v1540_v8  ;;  %2103 = vst [vmem:[%s3570_s4 + $0x2e8] sm:$0xff] %v1733_v0 }
 0x35d   : > { %v1544_v3 = vpop.f32.mrb[32].mxu1  ;;  %v1737_v46 = vpop.f32.mrb[64].mxu0 }
 0x35e   : > { %2106 = vst [vmem:[%s3570_s4 + $0x300] sm:$0xff] %v1544_v3  ;;  %2108 = vst [vmem:[%s3570_s4 + $0x310] sm:$0xff] %v1737_v46  ;;  %v1546_v50 = vpop.f32.mrb[33].mxu1  ;;  %v1739_v5 = vpop.f32.mrb[65].mxu0 }
 0x35f   : > { %2107 = vst [vmem:[%s3570_s4 + $0x308] sm:$0xff] %v1546_v50  ;;  %2109 = vst [vmem:[%s3570_s4 + $0x318] sm:$0xff] %v1739_v5  ;;  %v1548_v63 = vpop.f32.mrb[34].mxu1  ;;  %v1741_v9 = vpop.f32.mrb[66].mxu0 }
 0x360   : > { %2112 = vst [vmem:[%s3570_s4 + $0x330] sm:$0xff] %v1548_v63  ;;  %2114 = vst [vmem:[%s3570_s4 + $0x340] sm:$0xff] %v1741_v9  ;;  %v1550_v24 = vpop.f32.mrb[35].mxu1  ;;  %v1743_v10 = vpop.f32.mrb[67].mxu0 }
 0x361   : > { %2113 = vst [vmem:[%s3570_s4 + $0x338] sm:$0xff] %v1550_v24  ;;  %2115 = vst [vmem:[%s3570_s4 + $0x348] sm:$0xff] %v1743_v10 }
 0x365   : > { %v1554_v32 = vpop.f32.mrb[36].mxu1  ;;  %v1747_v20 = vpop.f32.mrb[68].mxu0 }
 0x366   : > { %2118 = vst [vmem:[%s3570_s4 + $0x360] sm:$0xff] %v1554_v32  ;;  %2120 = vst [vmem:[%s3570_s4 + $0x370] sm:$0xff] %v1747_v20  ;;  %v1556_v28 = vpop.f32.mrb[37].mxu1  ;;  %v1749_v13 = vpop.f32.mrb[69].mxu0 }
 0x367   : > { %2119 = vst [vmem:[%s3570_s4 + $0x368] sm:$0xff] %v1556_v28  ;;  %2121 = vst [vmem:[%s3570_s4 + $0x378] sm:$0xff] %v1749_v13  ;;  %v1558_v57 = vpop.f32.mrb[38].mxu1  ;;  %v1751_v41 = vpop.f32.mrb[70].mxu0 }
 0x368   : > { %2124 = vst [vmem:[%s3570_s4 + $0x390] sm:$0xff] %v1558_v57  ;;  %2126 = vst [vmem:[%s3570_s4 + $0x3a0] sm:$0xff] %v1751_v41  ;;  %v1560_v31 = vpop.f32.mrb[39].mxu1  ;;  %v1753_v6 = vpop.f32.mrb[71].mxu0 }
 0x369   : > { %2125 = vst [vmem:[%s3570_s4 + $0x398] sm:$0xff] %v1560_v31  ;;  %2127 = vst [vmem:[%s3570_s4 + $0x3a8] sm:$0xff] %v1753_v6 }
 0x36d   : > { %v1564_v16 = vpop.f32.mrb[40].mxu1  ;;  %v1757_v27 = vpop.f32.mrb[72].mxu0 }
 0x36e   : > { %2130 = vst [vmem:[%s3570_s4 + $0x3c0] sm:$0xff] %v1564_v16  ;;  %2132 = vst [vmem:[%s3570_s4 + $0x3d0] sm:$0xff] %v1757_v27  ;;  %v1566_v39 = vpop.f32.mrb[41].mxu1  ;;  %v1759_v60 = vpop.f32.mrb[73].mxu0 }
 0x36f   : > { %2131 = vst [vmem:[%s3570_s4 + $0x3c8] sm:$0xff] %v1566_v39  ;;  %2133 = vst [vmem:[%s3570_s4 + $0x3d8] sm:$0xff] %v1759_v60  ;;  %v1568_v58 = vpop.f32.mrb[42].mxu1  ;;  %v1761_v45 = vpop.f32.mrb[74].mxu0 }
 0x370   : > { %2136 = vst [vmem:[%s3570_s4 + $0x3f0] sm:$0xff] %v1568_v58  ;;  %2138 = vst [vmem:[%s3570_s4 + $0x400] sm:$0xff] %v1761_v45  ;;  %v1570_v56 = vpop.f32.mrb[43].mxu1  ;;  %v1763_v25 = vpop.f32.mrb[75].mxu0 }
 0x371   : > { %2137 = vst [vmem:[%s3570_s4 + $0x3f8] sm:$0xff] %v1570_v56  ;;  %2139 = vst [vmem:[%s3570_s4 + $0x408] sm:$0xff] %v1763_v25 }
 0x375   : > { %v1574_v47 = vpop.f32.mrb[44].mxu1  ;;  %v1767_v48 = vpop.f32.mrb[76].mxu0 }
 0x376   : > { %2142 = vst [vmem:[%s3570_s4 + $0x420] sm:$0xff] %v1574_v47  ;;  %2144 = vst [vmem:[%s3570_s4 + $0x430] sm:$0xff] %v1767_v48  ;;  %v1576_v18 = vpop.f32.mrb[45].mxu1  ;;  %v1769_v51 = vpop.f32.mrb[77].mxu0 }
 0x377   : > { %2143 = vst [vmem:[%s3570_s4 + $0x428] sm:$0xff] %v1576_v18  ;;  %2145 = vst [vmem:[%s3570_s4 + $0x438] sm:$0xff] %v1769_v51  ;;  %v1578_v15 = vpop.f32.mrb[46].mxu1  ;;  %v1771_v22 = vpop.f32.mrb[78].mxu0 }
 0x378   : > { %2148 = vst [vmem:[%s3570_s4 + $0x450] sm:$0xff] %v1578_v15  ;;  %2150 = vst [vmem:[%s3570_s4 + $0x460] sm:$0xff] %v1771_v22  ;;  %v1580_v36 = vpop.f32.mrb[47].mxu1  ;;  %v1773_v29 = vpop.f32.mrb[79].mxu0 }
 0x379   : > { %2149 = vst [vmem:[%s3570_s4 + $0x458] sm:$0xff] %v1580_v36  ;;  %2151 = vst [vmem:[%s3570_s4 + $0x468] sm:$0xff] %v1773_v29 }
 0x3bd   : > { %v1584_v34 = vpop.f32.mrb[48].mxu1  ;;  %v1777_v21 = vpop.f32.mrb[80].mxu0 }
 0x3be   : > { %2154 = vst [vmem:[%s3570_s4 + $0x480] sm:$0xff] %v1584_v34  ;;  %2156 = vst [vmem:[%s3570_s4 + $0x490] sm:$0xff] %v1777_v21  ;;  %v1586_v42 = vpop.f32.mrb[49].mxu1  ;;  %v1779_v26 = vpop.f32.mrb[81].mxu0 }
 0x3bf   : > { %2155 = vst [vmem:[%s3570_s4 + $0x488] sm:$0xff] %v1586_v42  ;;  %2157 = vst [vmem:[%s3570_s4 + $0x498] sm:$0xff] %v1779_v26  ;;  %v1588_v30 = vpop.f32.mrb[50].mxu1  ;;  %v1781_v1 = vpop.f32.mrb[82].mxu0 }
 0x3c0   : > { %2160 = vst [vmem:[%s3570_s4 + $0x4b0] sm:$0xff] %v1588_v30  ;;  %2162 = vst [vmem:[%s3570_s4 + $0x4c0] sm:$0xff] %v1781_v1  ;;  %v1590_v35 = vpop.f32.mrb[51].mxu1  ;;  %v1783_v43 = vpop.f32.mrb[83].mxu0 }
 0x3c1   : > { %2161 = vst [vmem:[%s3570_s4 + $0x4b8] sm:$0xff] %v1590_v35  ;;  %2163 = vst [vmem:[%s3570_s4 + $0x4c8] sm:$0xff] %v1783_v43 }
 0x3c5   : > { %v1594_v40 = vpop.f32.mrb[52].mxu1  ;;  %v1787_v49 = vpop.f32.mrb[84].mxu0 }
 0x3c6   : > { %2166 = vst [vmem:[%s3570_s4 + $0x4e0] sm:$0xff] %v1594_v40  ;;  %2168 = vst [vmem:[%s3570_s4 + $0x4f0] sm:$0xff] %v1787_v49  ;;  %v1596_v12 = vpop.f32.mrb[53].mxu1  ;;  %v1789_v55 = vpop.f32.mrb[85].mxu0 }
 0x3c7   : > { %2167 = vst [vmem:[%s3570_s4 + $0x4e8] sm:$0xff] %v1596_v12  ;;  %2169 = vst [vmem:[%s3570_s4 + $0x4f8] sm:$0xff] %v1789_v55  ;;  %v1598_v33 = vpop.f32.mrb[54].mxu1  ;;  %v1791_v4 = vpop.f32.mrb[86].mxu0 }
 0x3c8   : > { %2172 = vst [vmem:[%s3570_s4 + $0x510] sm:$0xff] %v1598_v33  ;;  %2174 = vst [vmem:[%s3570_s4 + $0x520] sm:$0xff] %v1791_v4  ;;  %v1600_v11 = vpop.f32.mrb[55].mxu1  ;;  %v1793_v52 = vpop.f32.mrb[87].mxu0 }
 0x3c9   : > { %2173 = vst [vmem:[%s3570_s4 + $0x518] sm:$0xff] %v1600_v11  ;;  %2175 = vst [vmem:[%s3570_s4 + $0x528] sm:$0xff] %v1793_v52 }
 0x3ce   : > { %v1604_v19 = vpop.f32.mrb[56].mxu1  ;;  %v1797_v53 = vpop.f32.mrb[88].mxu0 }
 0x3cf   : > { %2178 = vst [vmem:[%s3570_s4 + $0x540] sm:$0xff] %v1604_v19  ;;  %2180 = vst [vmem:[%s3570_s4 + $0x550] sm:$0xff] %v1797_v53  ;;  %v1606_v54 = vpop.f32.mrb[57].mxu1  ;;  %v1799_v7 = vpop.f32.mrb[89].mxu0 }
 0x3d0   : > { %2179 = vst [vmem:[%s3570_s4 + $0x548] sm:$0xff] %v1606_v54  ;;  %2181 = vst [vmem:[%s3570_s4 + $0x558] sm:$0xff] %v1799_v7  ;;  %v1608_v23 = vpop.f32.mrb[58].mxu1  ;;  %v1801_v14 = vpop.f32.mrb[90].mxu0 }
 0x3d1   : > { %2184 = vst [vmem:[%s3570_s4 + $0x570] sm:$0xff] %v1608_v23  ;;  %2186 = vst [vmem:[%s3570_s4 + $0x580] sm:$0xff] %v1801_v14  ;;  %v1610_v44 = vpop.f32.mrb[59].mxu1  ;;  %v1803_v38 = vpop.f32.mrb[91].mxu0 }
 0x3d2   : > { %2185 = vst [vmem:[%s3570_s4 + $0x578] sm:$0xff] %v1610_v44  ;;  %2187 = vst [vmem:[%s3570_s4 + $0x588] sm:$0xff] %v1803_v38 }
 0x3d6   : > { %v1614_v17 = vpop.f32.mrb[60].mxu1  ;;  %v1807_v37 = vpop.f32.mrb[92].mxu0 }
 0x3d7   : > { %2190 = vst [vmem:[%s3570_s4 + $0x5a0] sm:$0xff] %v1614_v17  ;;  %2192 = vst [vmem:[%s3570_s4 + $0x5b0] sm:$0xff] %v1807_v37  ;;  %v1616_v59 = vpop.f32.mrb[61].mxu1  ;;  %v1809_v2 = vpop.f32.mrb[93].mxu0 }
 0x3d8   : > { %2191 = vst [vmem:[%s3570_s4 + $0x5a8] sm:$0xff] %v1616_v59  ;;  %2193 = vst [vmem:[%s3570_s4 + $0x5b8] sm:$0xff] %v1809_v2  ;;  %v1618_v61 = vpop.f32.mrb[62].mxu1  ;;  %v1811_v62 = vpop.f32.mrb[94].mxu0 }
 0x3d9   : > { %2196 = vst [vmem:[%s3570_s4 + $0x5d0] sm:$0xff] %v1618_v61  ;;  %2198 = vst [vmem:[%s3570_s4 + $0x5e0] sm:$0xff] %v1811_v62  ;;  %v1620_v8 = vpop.f32.mrb[63].mxu1  ;;  %v1813_v0 = vpop.f32.mrb[95].mxu0 }
 0x3da   : > { %2197 = vst [vmem:[%s3570_s4 + $0x5d8] sm:$0xff] %v1620_v8  ;;  %2199 = vst [vmem:[%s3570_s4 + $0x5e8] sm:$0xff] %v1813_v0 }
 0x3de   : > { %v1850_v3 = vpop.f32.mrb[96].mxu0  ;;  %v1910_v46 = vpop.f32.mrb[64].mxu1 }
 0x3df   : > { %2013 = vst [vmem:[%s3570_s4 + $0x20] sm:$0xff] %v1850_v3  ;;  %2086 = vst [vmem:[%s3570_s4 + $0x260] sm:$0xff] %v1910_v46  ;;  %v1852_v50 = vpop.f32.mrb[97].mxu0  ;;  %v1912_v5 = vpop.f32.mrb[65].mxu1 }
 0x3e0   : > { %2015 = vst.msk [vmem:[%s3570_s4 + $0x28] sm:$0xff] %vm2014_vm1, %v1852_v50  ;;  %2087 = vst.msk [vmem:[%s3570_s4 + $0x268] sm:$0xff] %vm2014_vm1, %v1912_v5  ;;  %v1854_v63 = vpop.f32.mrb[98].mxu0  ;;  %v1914_v9 = vpop.f32.mrb[66].mxu1 }
 0x3e1   : > { %2020 = vst [vmem:[%s3570_s4 + $0x50] sm:$0xff] %v1854_v63  ;;  %2092 = vst [vmem:[%s3570_s4 + $0x290] sm:$0xff] %v1914_v9  ;;  %v1856_v24 = vpop.f32.mrb[99].mxu0  ;;  %v1916_v10 = vpop.f32.mrb[67].mxu1 }
 0x3e2   : > { %2021 = vst.msk [vmem:[%s3570_s4 + $0x58] sm:$0xff] %vm2014_vm1, %v1856_v24  ;;  %2093 = vst.msk [vmem:[%s3570_s4 + $0x298] sm:$0xff] %vm2014_vm1, %v1916_v10 }
 0x3e6   : > { %v1860_v32 = vpop.f32.mrb[100].mxu0  ;;  %v1920_v20 = vpop.f32.mrb[68].mxu1 }
 0x3e7   : > { %2026 = vst [vmem:[%s3570_s4 + $0x80] sm:$0xff] %v1860_v32  ;;  %2098 = vst [vmem:[%s3570_s4 + $0x2c0] sm:$0xff] %v1920_v20  ;;  %v1862_v28 = vpop.f32.mrb[101].mxu0  ;;  %v1922_v13 = vpop.f32.mrb[69].mxu1 }
 0x3e8   : > { %2027 = vst.msk [vmem:[%s3570_s4 + $0x88] sm:$0xff] %vm2014_vm1, %v1862_v28  ;;  %2099 = vst.msk [vmem:[%s3570_s4 + $0x2c8] sm:$0xff] %vm2014_vm1, %v1922_v13  ;;  %v1864_v57 = vpop.f32.mrb[102].mxu0  ;;  %v1924_v41 = vpop.f32.mrb[70].mxu1 }
 0x3e9   : > { %2032 = vst [vmem:[%s3570_s4 + $0xb0] sm:$0xff] %v1864_v57  ;;  %2104 = vst [vmem:[%s3570_s4 + $0x2f0] sm:$0xff] %v1924_v41  ;;  %v1866_v31 = vpop.f32.mrb[103].mxu0  ;;  %v1926_v6 = vpop.f32.mrb[71].mxu1 }
 0x3ea   : > { %2033 = vst.msk [vmem:[%s3570_s4 + $0xb8] sm:$0xff] %vm2014_vm1, %v1866_v31  ;;  %2105 = vst.msk [vmem:[%s3570_s4 + $0x2f8] sm:$0xff] %vm2014_vm1, %v1926_v6 }
 0x3ee   : > { %v1870_v16 = vpop.f32.mrb[104].mxu0  ;;  %v1930_v27 = vpop.f32.mrb[72].mxu1 }
 0x3ef   : > { %2038 = vst [vmem:[%s3570_s4 + $0xe0] sm:$0xff] %v1870_v16  ;;  %2110 = vst [vmem:[%s3570_s4 + $0x320] sm:$0xff] %v1930_v27  ;;  %v1872_v39 = vpop.f32.mrb[105].mxu0  ;;  %v1932_v60 = vpop.f32.mrb[73].mxu1 }
 0x3f0   : > { %2039 = vst.msk [vmem:[%s3570_s4 + $0xe8] sm:$0xff] %vm2014_vm1, %v1872_v39  ;;  %2111 = vst.msk [vmem:[%s3570_s4 + $0x328] sm:$0xff] %vm2014_vm1, %v1932_v60  ;;  %v1874_v58 = vpop.f32.mrb[106].mxu0  ;;  %v1934_v45 = vpop.f32.mrb[74].mxu1 }
 0x3f1   : > { %2044 = vst [vmem:[%s3570_s4 + $0x110] sm:$0xff] %v1874_v58  ;;  %2116 = vst [vmem:[%s3570_s4 + $0x350] sm:$0xff] %v1934_v45  ;;  %v1876_v56 = vpop.f32.mrb[107].mxu0  ;;  %v1936_v25 = vpop.f32.mrb[75].mxu1 }
 0x3f2   : > { %2045 = vst.msk [vmem:[%s3570_s4 + $0x118] sm:$0xff] %vm2014_vm1, %v1876_v56  ;;  %2117 = vst.msk [vmem:[%s3570_s4 + $0x358] sm:$0xff] %vm2014_vm1, %v1936_v25 }
 0x3f6   : > { %v1880_v47 = vpop.f32.mrb[108].mxu0  ;;  %v1940_v48 = vpop.f32.mrb[76].mxu1 }
 0x3f7   : > { %2050 = vst [vmem:[%s3570_s4 + $0x140] sm:$0xff] %v1880_v47  ;;  %2122 = vst [vmem:[%s3570_s4 + $0x380] sm:$0xff] %v1940_v48  ;;  %v1882_v18 = vpop.f32.mrb[109].mxu0  ;;  %v1942_v51 = vpop.f32.mrb[77].mxu1 }
 0x3f8   : > { %2051 = vst.msk [vmem:[%s3570_s4 + $0x148] sm:$0xff] %vm2014_vm1, %v1882_v18  ;;  %2123 = vst.msk [vmem:[%s3570_s4 + $0x388] sm:$0xff] %vm2014_vm1, %v1942_v51  ;;  %v1884_v15 = vpop.f32.mrb[110].mxu0  ;;  %v1944_v22 = vpop.f32.mrb[78].mxu1 }
 0x3f9   : > { %2056 = vst [vmem:[%s3570_s4 + $0x170] sm:$0xff] %v1884_v15  ;;  %2128 = vst [vmem:[%s3570_s4 + $0x3b0] sm:$0xff] %v1944_v22  ;;  %v1886_v36 = vpop.f32.mrb[111].mxu0  ;;  %v1946_v29 = vpop.f32.mrb[79].mxu1 }
 0x3fa   : > { %2057 = vst.msk [vmem:[%s3570_s4 + $0x178] sm:$0xff] %vm2014_vm1, %v1886_v36  ;;  %2129 = vst.msk [vmem:[%s3570_s4 + $0x3b8] sm:$0xff] %vm2014_vm1, %v1946_v29 }
 0x3fe   : > { %v1890_v34 = vpop.f32.mrb[112].mxu0  ;;  %v1950_v21 = vpop.f32.mrb[80].mxu1 }
 0x3ff   : > { %2062 = vst [vmem:[%s3570_s4 + $0x1a0] sm:$0xff] %v1890_v34  ;;  %2134 = vst [vmem:[%s3570_s4 + $0x3e0] sm:$0xff] %v1950_v21  ;;  %v1892_v42 = vpop.f32.mrb[113].mxu0  ;;  %v1952_v26 = vpop.f32.mrb[81].mxu1 }
 0x400   : > { %2063 = vst.msk [vmem:[%s3570_s4 + $0x1a8] sm:$0xff] %vm2014_vm1, %v1892_v42  ;;  %2135 = vst.msk [vmem:[%s3570_s4 + $0x3e8] sm:$0xff] %vm2014_vm1, %v1952_v26  ;;  %v1894_v30 = vpop.f32.mrb[114].mxu0  ;;  %v1954_v1 = vpop.f32.mrb[82].mxu1 }
 0x401   : > { %2068 = vst [vmem:[%s3570_s4 + $0x1d0] sm:$0xff] %v1894_v30  ;;  %2140 = vst [vmem:[%s3570_s4 + $0x410] sm:$0xff] %v1954_v1  ;;  %v1896_v35 = vpop.f32.mrb[115].mxu0  ;;  %v1956_v43 = vpop.f32.mrb[83].mxu1 }
 0x402   : > { %2069 = vst.msk [vmem:[%s3570_s4 + $0x1d8] sm:$0xff] %vm2014_vm1, %v1896_v35  ;;  %2141 = vst.msk [vmem:[%s3570_s4 + $0x418] sm:$0xff] %vm2014_vm1, %v1956_v43 }
 0x406   : > { %v1900_v40 = vpop.f32.mrb[116].mxu0  ;;  %v1960_v49 = vpop.f32.mrb[84].mxu1 }
 0x407   : > { %2074 = vst [vmem:[%s3570_s4 + $0x200] sm:$0xff] %v1900_v40  ;;  %2146 = vst [vmem:[%s3570_s4 + $0x440] sm:$0xff] %v1960_v49  ;;  %v1902_v12 = vpop.f32.mrb[117].mxu0  ;;  %v1962_v55 = vpop.f32.mrb[85].mxu1 }
 0x408   : > { %2075 = vst.msk [vmem:[%s3570_s4 + $0x208] sm:$0xff] %vm2014_vm1, %v1902_v12  ;;  %2147 = vst.msk [vmem:[%s3570_s4 + $0x448] sm:$0xff] %vm2014_vm1, %v1962_v55  ;;  %v1904_v33 = vpop.f32.mrb[118].mxu0  ;;  %v1964_v4 = vpop.f32.mrb[86].mxu1 }
 0x409   : > { %2080 = vst [vmem:[%s3570_s4 + $0x230] sm:$0xff] %v1904_v33  ;;  %2152 = vst [vmem:[%s3570_s4 + $0x470] sm:$0xff] %v1964_v4  ;;  %v1906_v11 = vpop.f32.mrb[119].mxu0  ;;  %v1966_v52 = vpop.f32.mrb[87].mxu1 }
 0x40a   : > { %2081 = vst.msk [vmem:[%s3570_s4 + $0x238] sm:$0xff] %vm2014_vm1, %v1906_v11  ;;  %2153 = vst.msk [vmem:[%s3570_s4 + $0x478] sm:$0xff] %vm2014_vm1, %v1966_v52 }
 0x40e   : > { %v1970_v19 = vpop.f32.mrb[88].mxu1 }
 0x40f   : > { %2158 = vst [vmem:[%s3570_s4 + $0x4a0] sm:$0xff] %v1970_v19  ;;  %v1972_v53 = vpop.f32.mrb[89].mxu1 }
 0x410   : > { %2159 = vst.msk [vmem:[%s3570_s4 + $0x4a8] sm:$0xff] %vm2014_vm1, %v1972_v53  ;;  %v1974_v54 = vpop.f32.mrb[90].mxu1 }
 0x411   : > { %2164 = vst [vmem:[%s3570_s4 + $0x4d0] sm:$0xff] %v1974_v54  ;;  %v1976_v7 = vpop.f32.mrb[91].mxu1 }
 0x412   : > { %2165 = vst.msk [vmem:[%s3570_s4 + $0x4d8] sm:$0xff] %vm2014_vm1, %v1976_v7 }
 0x416   : > { %v1980_v23 = vpop.f32.mrb[92].mxu1 }
 0x417   : > { %2170 = vst [vmem:[%s3570_s4 + $0x500] sm:$0xff] %v1980_v23  ;;  %v1982_v14 = vpop.f32.mrb[93].mxu1 }
 0x418   : > { %2171 = vst.msk [vmem:[%s3570_s4 + $0x508] sm:$0xff] %vm2014_vm1, %v1982_v14  ;;  %v1984_v44 = vpop.f32.mrb[94].mxu1 }
 0x419   : > { %2176 = vst [vmem:[%s3570_s4 + $0x530] sm:$0xff] %v1984_v44  ;;  %v1986_v38 = vpop.f32.mrb[95].mxu1 }
 0x41a   : > { %2177 = vst.msk [vmem:[%s3570_s4 + $0x538] sm:$0xff] %vm2014_vm1, %v1986_v38 }
 0x41e   : > { %v1990_v17 = vpop.f32.mrb[96].mxu1 }
 0x41f   : > { %2182 = vst [vmem:[%s3570_s4 + $0x560] sm:$0xff] %v1990_v17  ;;  %v1992_v37 = vpop.f32.mrb[97].mxu1 }
 0x420   : > { %2183 = vst.msk [vmem:[%s3570_s4 + $0x568] sm:$0xff] %vm2014_vm1, %v1992_v37  ;;  %v1994_v59 = vpop.f32.mrb[98].mxu1 }
 0x421   : > { %2188 = vst [vmem:[%s3570_s4 + $0x590] sm:$0xff] %v1994_v59  ;;  %v1996_v2 = vpop.f32.mrb[99].mxu1 }
 0x422   : > { %2189 = vst.msk [vmem:[%s3570_s4 + $0x598] sm:$0xff] %vm2014_vm1, %v1996_v2 }
 0x426   : > { %v2000_v61 = vpop.f32.mrb[100].mxu1 }
 0x427   : > { %2194 = vst [vmem:[%s3570_s4 + $0x5c0] sm:$0xff] %v2000_v61  ;;  %v2002_v62 = vpop.f32.mrb[101].mxu1 }
 0x428   : > { %2195 = vst.msk [vmem:[%s3570_s4 + $0x5c8] sm:$0xff] %vm2014_vm1, %v2002_v62  ;;  %v2004_v8 = vpop.f32.mrb[102].mxu1 }
 0x429   : > { %2200 = vst [vmem:[%s3570_s4 + $0x5f0] sm:$0xff] %v2004_v8  ;;  %v2006_v0 = vpop.f32.mrb[103].mxu1 }
 0x42a   : > { %2201 = vst.msk [vmem:[%s3570_s4 + $0x5f8] sm:$0xff] %vm2014_vm1, %v2006_v0 }
 0x42b PF: > { %s13_s14 = sadd.s32 1, %s2897_s14   ;;  %s3843_s12 = smov %s2893_s13 }
 0x42c   : > { %p10_p5 = scmp.ge.s32.totalorder %s13_s14, 4   ;;  %s3844_s13 = smov %s3846_s15 }
 0x42e   :  { %12 = sbr.rel (!%p10_p5) target bundleno = 2 (0x2), region = 68 }

</bundles_post_ra>
